<compile_context>
chip_gen: v7x
topology: tpu7x:2x2x1
jax: 0.10.0
libtpu: 0.0.40
codegen_flags: <defaults>
</compile_context>

<pallas_src>
import functools

import jax
import jax.numpy as jnp
from jax.experimental import pallas as pl
from jax.experimental.pallas import tpu as pltpu

_EPS = 1e-5


def _resblock_kernel(x_ref, w1_ref, w2_ref, g1_ref, b1_ref, g2_ref, b2_ref,
                     mask_ref, o_ref, pad_ref, patch_ref, *, N, H, W, C):
    """Fused ResidualBlock forward in channel-major lane-dense layout.

    x_ref    : (C, NHW)           flattened input (NHW on the lane axis)
    w1_ref   : (C, 9*C)           conv1 weights, [co, tap*C + ci]
    w2_ref   : (C, 9*C)           conv2 weights
    g*/b*    : (C, 1)             BatchNorm affine params
    mask_ref : (9, NHW)           1.0 where the (dh,dw)-shifted tap is in-bounds
    o_ref    : (C, NHW)           output slab (lane-dense store)
    pad_ref  : (C, NHW + 2W + 2)  scratch: activation with a zero halo of W+1
    patch_ref: (9*C, NHW)         scratch: im2col patch matrix
    """
    NHW = N * H * W
    PAD = W + 1

    def conv3x3(act, w_ref):
        # Write the activation into the zero-haloed scratch; each of the 9 taps
        # is a static lane-offset window of it, masked at the H/W borders.  All
        # taps are packed into one (9C, NHW) patch matrix -> a single K=9C dot
        # with a lane-dense (C, NHW) result.
        pad_ref[:, PAD:PAD + NHW] = act
        for kh in range(3):
            for kw in range(3):
                tap = kh * 3 + kw
                off = PAD + (kh - 1) * W + (kw - 1)
                patch_ref[tap * C:(tap + 1) * C, :] = (
                    pad_ref[:, off:off + NHW] * mask_ref[tap:tap + 1, :])
        return jnp.dot(w_ref[...], patch_ref[...],
                       preferred_element_type=jnp.float32)

    def batchnorm(h, g_ref, b_ref):
        # training-mode BatchNorm2d: one-pass biased batch stats over (N,H,W),
        # which is exactly the lane axis in this layout.
        s1 = jnp.sum(h, axis=-1, keepdims=True)
        s2 = jnp.sum(h * h, axis=-1, keepdims=True)
        mean = s1 * (1.0 / NHW)
        var = s2 * (1.0 / NHW) - mean * mean
        return g_ref[...] * (h - mean) * jax.lax.rsqrt(var + _EPS) + b_ref[...]

    # Zero the halo once; the interior is fully overwritten before each conv.
    pad_ref[...] = jnp.zeros_like(pad_ref)

    x = x_ref[...]                               # (C, NHW); also the residual

    out = conv3x3(x, w1_ref)                     # conv1
    out = jnp.maximum(out, 0.0)                  # relu
    out = batchnorm(out, g1_ref, b1_ref)         # bn1

    out = conv3x3(out, w2_ref)                   # conv2
    out = out + x                                # += residual (downsample None)
    out = jnp.maximum(out, 0.0)                  # relu
    out = batchnorm(out, g2_ref, b2_ref)         # bn2

    o_ref[...] = out


def _tap_masks(N, H, W):
    """(9, N*H*W) validity masks for the 3x3 taps (1.0 inside, 0.0 at borders)."""
    p = jnp.arange(N * H * W, dtype=jnp.int32)
    h = (p // W) % H
    w = p % W
    rows = []
    for kh in range(3):
        for kw in range(3):
            dh, dw = kh - 1, kw - 1
            ok = ((h + dh >= 0) & (h + dh < H) & (w + dw >= 0) & (w + dw < W))
            rows.append(ok.astype(jnp.float32))
    return jnp.stack(rows, axis=0)


def residual_block_forward(x_nchw, params):
    N, Cin, H, W = x_nchw.shape
    Cout = params["w1"].shape[-1]
    assert Cin == Cout, "downsample is None -> in/out channels must match"
    # TODO(synk): arbitrary `downsample` submodules are not translated (None here).
    C = Cout
    NHW = N * H * W

    # Layout plumbing only (wrapper side): NCHW -> channel-major (C, NHW).
    x_flat = jnp.transpose(x_nchw, (1, 0, 2, 3)).reshape(C, NHW).astype(jnp.float32)

    def w_mat(w):                                # (9, Ci, Co) -> (Co, 9*Ci)
        return jnp.transpose(w, (2, 0, 1)).reshape(w.shape[2], 9 * w.shape[1])

    args = (
        x_flat,
        w_mat(params["w1"]).astype(jnp.float32),
        w_mat(params["w2"]).astype(jnp.float32),
        params["g1"].reshape(C, 1).astype(jnp.float32),
        params["b1"].reshape(C, 1).astype(jnp.float32),
        params["g2"].reshape(C, 1).astype(jnp.float32),
        params["b2"].reshape(C, 1).astype(jnp.float32),
        _tap_masks(N, H, W),
    )

    vmem = pl.BlockSpec(memory_space=pltpu.MemorySpace.VMEM)
    out_flat = pl.pallas_call(
        functools.partial(_resblock_kernel, N=N, H=H, W=W, C=C),
        out_shape=jax.ShapeDtypeStruct((C, NHW), jnp.float32),
        in_specs=[vmem] * 8,
        out_specs=vmem,
        scratch_shapes=[
            pltpu.VMEM((C, NHW + 2 * (W + 1)), jnp.float32),   # zero-haloed activation
            pltpu.VMEM((9 * C, NHW), jnp.float32),             # im2col patch matrix
        ],
    )(*args)

    out = out_flat.reshape(C, N, H, W)
    return jnp.transpose(out, (1, 0, 2, 3))      # back to NCHW


def _reference_forward(x_nchw, params):
    """Pure-JAX reference matching the PyTorch forward (for validation)."""
    def conv(x, w_flat):
        w = w_flat.reshape(3, 3, w_flat.shape[1], w_flat.shape[2])  # HWIO
        return jax.lax.conv_general_dilated(
            x, w, window_strides=(1, 1), padding=((1, 1), (1, 1)),
            dimension_numbers=("NCHW", "HWIO", "NCHW"),
            precision=jax.lax.Precision.HIGHEST)

    def bn(x, g, b):
        mean = jnp.mean(x, axis=(0, 2, 3), keepdims=True)
        var = jnp.mean((x - mean) ** 2, axis=(0, 2, 3), keepdims=True)
        return (g.reshape(1, -1, 1, 1) * (x - mean) * jax.lax.rsqrt(var + _EPS)
                + b.reshape(1, -1, 1, 1))

    out = conv(x_nchw, params["w1"])
    out = jnp.maximum(out, 0.0)
    out = bn(out, params["g1"], params["b1"])
    out = conv(out, params["w2"])
    out = out + x_nchw
    out = jnp.maximum(out, 0.0)
    out = bn(out, params["g2"], params["b2"])
    return out


if __name__ == "__main__":
    key = jax.random.PRNGKey(0)
    k_w1, k_w2, k_x = jax.random.split(key, 3)

    N, C, H, W = 2, 4, 16, 16                    # in_channels == out_channels == 4

    # Deterministic synthetic parameters (conv3x3 weights, HWIO flattened over
    # the 3x3 taps; BatchNorm gamma/beta at their PyTorch defaults 1 / 0).
    params = {
        "w1": 0.1 * jax.random.normal(k_w1, (9, C, C), jnp.float32),
        "w2": 0.1 * jax.random.normal(k_w2, (9, C, C), jnp.float32),
        "g1": jnp.ones((C,), jnp.float32),
        "b1": jnp.zeros((C,), jnp.float32),
        "g2": jnp.ones((C,), jnp.float32),
        "b2": jnp.zeros((C,), jnp.float32),
    }

    x = jax.random.normal(k_x, (N, C, H, W), jnp.float32)

    out = jax.block_until_ready(residual_block_forward(x, params))
    ref = jax.block_until_ready(_reference_forward(x, params))

    assert out.shape == (N, C, H, W) and out.dtype == jnp.float32
    assert bool(jnp.all(jnp.isfinite(out)))
    assert bool(jnp.allclose(out, ref, rtol=1e-3, atol=1e-3)), (
        "Pallas kernel mismatch vs JAX reference")

    print("KERNEL_OK")
</pallas_src>

<mosaic_0001>
module attributes {stable_mosaic.version = 11 : i64} {
  func.func @_resblock_kernel(%arg0: memref<4x512xf32, #tpu.memory_space<vmem>>, %arg1: memref<4x36xf32, #tpu.memory_space<vmem>>, %arg2: memref<4x36xf32, #tpu.memory_space<vmem>>, %arg3: memref<4x1xf32, #tpu.memory_space<vmem>>, %arg4: memref<4x1xf32, #tpu.memory_space<vmem>>, %arg5: memref<4x1xf32, #tpu.memory_space<vmem>>, %arg6: memref<4x1xf32, #tpu.memory_space<vmem>>, %arg7: memref<9x512xf32, #tpu.memory_space<vmem>>, %arg8: memref<4x512xf32, #tpu.memory_space<vmem>>, %arg9: memref<4x546xf32, #tpu.memory_space<vmem>>, %arg10: memref<36x512xf32, #tpu.memory_space<vmem>>) attributes {dimension_semantics = [], scalar_prefetch = 0 : i64, scratch_operands = 2 : i64, tpu.core_type = #tpu.core_type<tc>} {
    %cst = arith.constant 0.000000e+00 : f32
    %0 = vector.broadcast %cst : f32 to vector<4x546xf32>
    %c0 = arith.constant 0 : index
    %c0_0 = arith.constant 0 : index
    %1 = vector.load %arg9[%c0, %c0_0] : memref<4x546xf32, #tpu.memory_space<vmem>>, vector<4x546xf32>
    tpu.vector_store %arg9[%c0, %c0_0], %0 {strides = array<i32>} : memref<4x546xf32, #tpu.memory_space<vmem>>, vector<4x546xf32>,
    %c0_1 = arith.constant 0 : index
    %c0_2 = arith.constant 0 : index
    %2 = vector.load %arg0[%c0_1, %c0_2] : memref<4x512xf32, #tpu.memory_space<vmem>>, vector<4x512xf32>
    %c0_3 = arith.constant 0 : index
    %c17 = arith.constant 17 : index
    %3 = vector.load %arg9[%c0_3, %c17] : memref<4x546xf32, #tpu.memory_space<vmem>>, vector<4x512xf32>
    tpu.vector_store %arg9[%c0_3, %c17], %2 {strides = array<i32>} : memref<4x546xf32, #tpu.memory_space<vmem>>, vector<4x512xf32>,
    %c0_4 = arith.constant 0 : index
    %c0_5 = arith.constant 0 : index
    %4 = vector.load %arg9[%c0_4, %c0_5] : memref<4x546xf32, #tpu.memory_space<vmem>>, vector<4x512xf32>
    %c0_6 = arith.constant 0 : index
    %c0_7 = arith.constant 0 : index
    %5 = vector.load %arg7[%c0_6, %c0_7] : memref<9x512xf32, #tpu.memory_space<vmem>>, vector<1x512xf32>
    %6 = vector.broadcast %5 : vector<1x512xf32> to vector<4x512xf32>
    %7 = arith.mulf %4, %6 : vector<4x512xf32>
    %c0_8 = arith.constant 0 : index
    %c0_9 = arith.constant 0 : index
    %8 = vector.load %arg10[%c0_8, %c0_9] : memref<36x512xf32, #tpu.memory_space<vmem>>, vector<4x512xf32>
    tpu.vector_store %arg10[%c0_8, %c0_9], %7 {strides = array<i32>} : memref<36x512xf32, #tpu.memory_space<vmem>>, vector<4x512xf32>,
    %c0_10 = arith.constant 0 : index
    %c1 = arith.constant 1 : index
    %9 = vector.load %arg9[%c0_10, %c1] : memref<4x546xf32, #tpu.memory_space<vmem>>, vector<4x512xf32>
    %c1_11 = arith.constant 1 : index
    %c0_12 = arith.constant 0 : index
    %10 = vector.load %arg7[%c1_11, %c0_12] : memref<9x512xf32, #tpu.memory_space<vmem>>, vector<1x512xf32>
    %11 = vector.broadcast %10 : vector<1x512xf32> to vector<4x512xf32>
    %12 = arith.mulf %9, %11 : vector<4x512xf32>
    %c4 = arith.constant 4 : index
    %c0_13 = arith.constant 0 : index
    %13 = vector.load %arg10[%c4, %c0_13] : memref<36x512xf32, #tpu.memory_space<vmem>>, vector<4x512xf32>
    tpu.vector_store %arg10[%c4, %c0_13], %12 {strides = array<i32>} : memref<36x512xf32, #tpu.memory_space<vmem>>, vector<4x512xf32>,
    %c0_14 = arith.constant 0 : index
    %c2 = arith.constant 2 : index
    %14 = vector.load %arg9[%c0_14, %c2] : memref<4x546xf32, #tpu.memory_space<vmem>>, vector<4x512xf32>
    %c2_15 = arith.constant 2 : index
    %c0_16 = arith.constant 0 : index
    %15 = vector.load %arg7[%c2_15, %c0_16] : memref<9x512xf32, #tpu.memory_space<vmem>>, vector<1x512xf32>
    %16 = vector.broadcast %15 : vector<1x512xf32> to vector<4x512xf32>
    %17 = arith.mulf %14, %16 : vector<4x512xf32>
    %c8 = arith.constant 8 : index
    %c0_17 = arith.constant 0 : index
    %18 = vector.load %arg10[%c8, %c0_17] : memref<36x512xf32, #tpu.memory_space<vmem>>, vector<4x512xf32>
    tpu.vector_store %arg10[%c8, %c0_17], %17 {strides = array<i32>} : memref<36x512xf32, #tpu.memory_space<vmem>>, vector<4x512xf32>,
    %c0_18 = arith.constant 0 : index
    %c16 = arith.constant 16 : index
    %19 = vector.load %arg9[%c0_18, %c16] : memref<4x546xf32, #tpu.memory_space<vmem>>, vector<4x512xf32>
    %c3 = arith.constant 3 : index
    %c0_19 = arith.constant 0 : index
    %20 = vector.load %arg7[%c3, %c0_19] : memref<9x512xf32, #tpu.memory_space<vmem>>, vector<1x512xf32>
    %21 = vector.broadcast %20 : vector<1x512xf32> to vector<4x512xf32>
    %22 = arith.mulf %19, %21 : vector<4x512xf32>
    %c12 = arith.constant 12 : index
    %c0_20 = arith.constant 0 : index
    %23 = vector.load %arg10[%c12, %c0_20] : memref<36x512xf32, #tpu.memory_space<vmem>>, vector<4x512xf32>
    tpu.vector_store %arg10[%c12, %c0_20], %22 {strides = array<i32>} : memref<36x512xf32, #tpu.memory_space<vmem>>, vector<4x512xf32>,
    %c0_21 = arith.constant 0 : index
    %c17_22 = arith.constant 17 : index
    %24 = vector.load %arg9[%c0_21, %c17_22] : memref<4x546xf32, #tpu.memory_space<vmem>>, vector<4x512xf32>
    %c4_23 = arith.constant 4 : index
    %c0_24 = arith.constant 0 : index
    %25 = vector.load %arg7[%c4_23, %c0_24] : memref<9x512xf32, #tpu.memory_space<vmem>>, vector<1x512xf32>
    %26 = vector.broadcast %25 : vector<1x512xf32> to vector<4x512xf32>
    %27 = arith.mulf %24, %26 : vector<4x512xf32>
    %c16_25 = arith.constant 16 : index
    %c0_26 = arith.constant 0 : index
    %28 = vector.load %arg10[%c16_25, %c0_26] : memref<36x512xf32, #tpu.memory_space<vmem>>, vector<4x512xf32>
    tpu.vector_store %arg10[%c16_25, %c0_26], %27 {strides = array<i32>} : memref<36x512xf32, #tpu.memory_space<vmem>>, vector<4x512xf32>,
    %c0_27 = arith.constant 0 : index
    %c18 = arith.constant 18 : index
    %29 = vector.load %arg9[%c0_27, %c18] : memref<4x546xf32, #tpu.memory_space<vmem>>, vector<4x512xf32>
    %c5 = arith.constant 5 : index
    %c0_28 = arith.constant 0 : index
    %30 = vector.load %arg7[%c5, %c0_28] : memref<9x512xf32, #tpu.memory_space<vmem>>, vector<1x512xf32>
    %31 = vector.broadcast %30 : vector<1x512xf32> to vector<4x512xf32>
    %32 = arith.mulf %29, %31 : vector<4x512xf32>
    %c20 = arith.constant 20 : index
    %c0_29 = arith.constant 0 : index
    %33 = vector.load %arg10[%c20, %c0_29] : memref<36x512xf32, #tpu.memory_space<vmem>>, vector<4x512xf32>
    tpu.vector_store %arg10[%c20, %c0_29], %32 {strides = array<i32>} : memref<36x512xf32, #tpu.memory_space<vmem>>, vector<4x512xf32>,
    %c0_30 = arith.constant 0 : index
    %c32 = arith.constant 32 : index
    %34 = vector.load %arg9[%c0_30, %c32] : memref<4x546xf32, #tpu.memory_space<vmem>>, vector<4x512xf32>
    %c6 = arith.constant 6 : index
    %c0_31 = arith.constant 0 : index
    %35 = vector.load %arg7[%c6, %c0_31] : memref<9x512xf32, #tpu.memory_space<vmem>>, vector<1x512xf32>
    %36 = vector.broadcast %35 : vector<1x512xf32> to vector<4x512xf32>
    %37 = arith.mulf %34, %36 : vector<4x512xf32>
    %c24 = arith.constant 24 : index
    %c0_32 = arith.constant 0 : index
    %38 = vector.load %arg10[%c24, %c0_32] : memref<36x512xf32, #tpu.memory_space<vmem>>, vector<4x512xf32>
    tpu.vector_store %arg10[%c24, %c0_32], %37 {strides = array<i32>} : memref<36x512xf32, #tpu.memory_space<vmem>>, vector<4x512xf32>,
    %c0_33 = arith.constant 0 : index
    %c33 = arith.constant 33 : index
    %39 = vector.load %arg9[%c0_33, %c33] : memref<4x546xf32, #tpu.memory_space<vmem>>, vector<4x512xf32>
    %c7 = arith.constant 7 : index
    %c0_34 = arith.constant 0 : index
    %40 = vector.load %arg7[%c7, %c0_34] : memref<9x512xf32, #tpu.memory_space<vmem>>, vector<1x512xf32>
    %41 = vector.broadcast %40 : vector<1x512xf32> to vector<4x512xf32>
    %42 = arith.mulf %39, %41 : vector<4x512xf32>
    %c28 = arith.constant 28 : index
    %c0_35 = arith.constant 0 : index
    %43 = vector.load %arg10[%c28, %c0_35] : memref<36x512xf32, #tpu.memory_space<vmem>>, vector<4x512xf32>
    tpu.vector_store %arg10[%c28, %c0_35], %42 {strides = array<i32>} : memref<36x512xf32, #tpu.memory_space<vmem>>, vector<4x512xf32>,
    %c0_36 = arith.constant 0 : index
    %c34 = arith.constant 34 : index
    %44 = vector.load %arg9[%c0_36, %c34] : memref<4x546xf32, #tpu.memory_space<vmem>>, vector<4x512xf32>
    %c8_37 = arith.constant 8 : index
    %c0_38 = arith.constant 0 : index
    %45 = vector.load %arg7[%c8_37, %c0_38] : memref<9x512xf32, #tpu.memory_space<vmem>>, vector<1x512xf32>
    %46 = vector.broadcast %45 : vector<1x512xf32> to vector<4x512xf32>
    %47 = arith.mulf %44, %46 : vector<4x512xf32>
    %c32_39 = arith.constant 32 : index
    %c0_40 = arith.constant 0 : index
    %48 = vector.load %arg10[%c32_39, %c0_40] : memref<36x512xf32, #tpu.memory_space<vmem>>, vector<4x512xf32>
    tpu.vector_store %arg10[%c32_39, %c0_40], %47 {strides = array<i32>} : memref<36x512xf32, #tpu.memory_space<vmem>>, vector<4x512xf32>,
    %c0_41 = arith.constant 0 : index
    %c0_42 = arith.constant 0 : index
    %49 = vector.load %arg1[%c0_41, %c0_42] : memref<4x36xf32, #tpu.memory_space<vmem>>, vector<4x36xf32>
    %c0_43 = arith.constant 0 : index
    %c0_44 = arith.constant 0 : index
    %50 = vector.load %arg10[%c0_43, %c0_44] : memref<36x512xf32, #tpu.memory_space<vmem>>, vector<36x512xf32>
    %cst_45 = arith.constant dense<0.000000e+00> : vector<4x512xf32>
    %51 = tpu.matmul %49, %50, %cst_45 {dimension_numbers = #tpu.dot_dimension_numbers<[1], [0], [0], [1], [0, 0, 1, 1], [], []>} : vector<4x36xf32>, vector<36x512xf32>, vector<4x512xf32> -> vector<4x512xf32>
    %cst_46 = arith.constant 0.000000e+00 : f32
    %52 = vector.broadcast %cst_46 : f32 to vector<4x512xf32>
    %53 = arith.maximumf %51, %52 : vector<4x512xf32>
    %cst_47 = arith.constant dense<0.000000e+00> : vector<4xf32>
    %54 = vector.multi_reduction <add>, %53, %cst_47 [1] : vector<4x512xf32> to vector<4xf32>
    %55 = vector.shape_cast %54 : vector<4xf32> to vector<4x1xf32>
    %56 = arith.mulf %53, %53 : vector<4x512xf32>
    %cst_48 = arith.constant dense<0.000000e+00> : vector<4xf32>
    %57 = vector.multi_reduction <add>, %56, %cst_48 [1] : vector<4x512xf32> to vector<4xf32>
    %58 = vector.shape_cast %57 : vector<4xf32> to vector<4x1xf32>
    %cst_49 = arith.constant 0.001953125 : f32
    %59 = vector.broadcast %cst_49 : f32 to vector<4x1xf32>
    %60 = arith.mulf %55, %59 : vector<4x1xf32>
    %cst_50 = arith.constant 0.001953125 : f32
    %61 = vector.broadcast %cst_50 : f32 to vector<4x1xf32>
    %62 = arith.mulf %58, %61 : vector<4x1xf32>
    %63 = arith.mulf %60, %60 : vector<4x1xf32>
    %64 = arith.subf %62, %63 : vector<4x1xf32>
    %c0_51 = arith.constant 0 : index
    %c0_52 = arith.constant 0 : index
    %65 = vector.load %arg3[%c0_51, %c0_52] : memref<4x1xf32, #tpu.memory_space<vmem>>, vector<4x1xf32>
    %66 = vector.broadcast %60 : vector<4x1xf32> to vector<4x512xf32>
    %67 = arith.subf %53, %66 : vector<4x512xf32>
    %68 = vector.broadcast %65 : vector<4x1xf32> to vector<4x512xf32>
    %69 = arith.mulf %68, %67 : vector<4x512xf32>
    %cst_53 = arith.constant 9.99999974E-6 : f32
    %70 = vector.broadcast %cst_53 : f32 to vector<4x1xf32>
    %71 = arith.addf %64, %70 : vector<4x1xf32>
    %72 = math.rsqrt %71 : vector<4x1xf32>
    %73 = vector.broadcast %72 : vector<4x1xf32> to vector<4x512xf32>
    %74 = arith.mulf %69, %73 : vector<4x512xf32>
    %c0_54 = arith.constant 0 : index
    %c0_55 = arith.constant 0 : index
    %75 = vector.load %arg4[%c0_54, %c0_55] : memref<4x1xf32, #tpu.memory_space<vmem>>, vector<4x1xf32>
    %76 = vector.broadcast %75 : vector<4x1xf32> to vector<4x512xf32>
    %77 = arith.addf %74, %76 : vector<4x512xf32>
    %c0_56 = arith.constant 0 : index
    %c17_57 = arith.constant 17 : index
    %78 = vector.load %arg9[%c0_56, %c17_57] : memref<4x546xf32, #tpu.memory_space<vmem>>, vector<4x512xf32>
    tpu.vector_store %arg9[%c0_56, %c17_57], %77 {strides = array<i32>} : memref<4x546xf32, #tpu.memory_space<vmem>>, vector<4x512xf32>,
    %c0_58 = arith.constant 0 : index
    %c0_59 = arith.constant 0 : index
    %79 = vector.load %arg9[%c0_58, %c0_59] : memref<4x546xf32, #tpu.memory_space<vmem>>, vector<4x512xf32>
    %c0_60 = arith.constant 0 : index
    %c0_61 = arith.constant 0 : index
    %80 = vector.load %arg7[%c0_60, %c0_61] : memref<9x512xf32, #tpu.memory_space<vmem>>, vector<1x512xf32>
    %81 = vector.broadcast %80 : vector<1x512xf32> to vector<4x512xf32>
    %82 = arith.mulf %79, %81 : vector<4x512xf32>
    %c0_62 = arith.constant 0 : index
    %c0_63 = arith.constant 0 : index
    %83 = vector.load %arg10[%c0_62, %c0_63] : memref<36x512xf32, #tpu.memory_space<vmem>>, vector<4x512xf32>
    tpu.vector_store %arg10[%c0_62, %c0_63], %82 {strides = array<i32>} : memref<36x512xf32, #tpu.memory_space<vmem>>, vector<4x512xf32>,
    %c0_64 = arith.constant 0 : index
    %c1_65 = arith.constant 1 : index
    %84 = vector.load %arg9[%c0_64, %c1_65] : memref<4x546xf32, #tpu.memory_space<vmem>>, vector<4x512xf32>
    %c1_66 = arith.constant 1 : index
    %c0_67 = arith.constant 0 : index
    %85 = vector.load %arg7[%c1_66, %c0_67] : memref<9x512xf32, #tpu.memory_space<vmem>>, vector<1x512xf32>
    %86 = vector.broadcast %85 : vector<1x512xf32> to vector<4x512xf32>
    %87 = arith.mulf %84, %86 : vector<4x512xf32>
    %c4_68 = arith.constant 4 : index
    %c0_69 = arith.constant 0 : index
    %88 = vector.load %arg10[%c4_68, %c0_69] : memref<36x512xf32, #tpu.memory_space<vmem>>, vector<4x512xf32>
    tpu.vector_store %arg10[%c4_68, %c0_69], %87 {strides = array<i32>} : memref<36x512xf32, #tpu.memory_space<vmem>>, vector<4x512xf32>,
    %c0_70 = arith.constant 0 : index
    %c2_71 = arith.constant 2 : index
    %89 = vector.load %arg9[%c0_70, %c2_71] : memref<4x546xf32, #tpu.memory_space<vmem>>, vector<4x512xf32>
    %c2_72 = arith.constant 2 : index
    %c0_73 = arith.constant 0 : index
    %90 = vector.load %arg7[%c2_72, %c0_73] : memref<9x512xf32, #tpu.memory_space<vmem>>, vector<1x512xf32>
    %91 = vector.broadcast %90 : vector<1x512xf32> to vector<4x512xf32>
    %92 = arith.mulf %89, %91 : vector<4x512xf32>
    %c8_74 = arith.constant 8 : index
    %c0_75 = arith.constant 0 : index
    %93 = vector.load %arg10[%c8_74, %c0_75] : memref<36x512xf32, #tpu.memory_space<vmem>>, vector<4x512xf32>
    tpu.vector_store %arg10[%c8_74, %c0_75], %92 {strides = array<i32>} : memref<36x512xf32, #tpu.memory_space<vmem>>, vector<4x512xf32>,
    %c0_76 = arith.constant 0 : index
    %c16_77 = arith.constant 16 : index
    %94 = vector.load %arg9[%c0_76, %c16_77] : memref<4x546xf32, #tpu.memory_space<vmem>>, vector<4x512xf32>
    %c3_78 = arith.constant 3 : index
    %c0_79 = arith.constant 0 : index
    %95 = vector.load %arg7[%c3_78, %c0_79] : memref<9x512xf32, #tpu.memory_space<vmem>>, vector<1x512xf32>
    %96 = vector.broadcast %95 : vector<1x512xf32> to vector<4x512xf32>
    %97 = arith.mulf %94, %96 : vector<4x512xf32>
    %c12_80 = arith.constant 12 : index
    %c0_81 = arith.constant 0 : index
    %98 = vector.load %arg10[%c12_80, %c0_81] : memref<36x512xf32, #tpu.memory_space<vmem>>, vector<4x512xf32>
    tpu.vector_store %arg10[%c12_80, %c0_81], %97 {strides = array<i32>} : memref<36x512xf32, #tpu.memory_space<vmem>>, vector<4x512xf32>,
    %c0_82 = arith.constant 0 : index
    %c17_83 = arith.constant 17 : index
    %99 = vector.load %arg9[%c0_82, %c17_83] : memref<4x546xf32, #tpu.memory_space<vmem>>, vector<4x512xf32>
    %c4_84 = arith.constant 4 : index
    %c0_85 = arith.constant 0 : index
    %100 = vector.load %arg7[%c4_84, %c0_85] : memref<9x512xf32, #tpu.memory_space<vmem>>, vector<1x512xf32>
    %101 = vector.broadcast %100 : vector<1x512xf32> to vector<4x512xf32>
    %102 = arith.mulf %99, %101 : vector<4x512xf32>
    %c16_86 = arith.constant 16 : index
    %c0_87 = arith.constant 0 : index
    %103 = vector.load %arg10[%c16_86, %c0_87] : memref<36x512xf32, #tpu.memory_space<vmem>>, vector<4x512xf32>
    tpu.vector_store %arg10[%c16_86, %c0_87], %102 {strides = array<i32>} : memref<36x512xf32, #tpu.memory_space<vmem>>, vector<4x512xf32>,
    %c0_88 = arith.constant 0 : index
    %c18_89 = arith.constant 18 : index
    %104 = vector.load %arg9[%c0_88, %c18_89] : memref<4x546xf32, #tpu.memory_space<vmem>>, vector<4x512xf32>
    %c5_90 = arith.constant 5 : index
    %c0_91 = arith.constant 0 : index
    %105 = vector.load %arg7[%c5_90, %c0_91] : memref<9x512xf32, #tpu.memory_space<vmem>>, vector<1x512xf32>
    %106 = vector.broadcast %105 : vector<1x512xf32> to vector<4x512xf32>
    %107 = arith.mulf %104, %106 : vector<4x512xf32>
    %c20_92 = arith.constant 20 : index
    %c0_93 = arith.constant 0 : index
    %108 = vector.load %arg10[%c20_92, %c0_93] : memref<36x512xf32, #tpu.memory_space<vmem>>, vector<4x512xf32>
    tpu.vector_store %arg10[%c20_92, %c0_93], %107 {strides = array<i32>} : memref<36x512xf32, #tpu.memory_space<vmem>>, vector<4x512xf32>,
    %c0_94 = arith.constant 0 : index
    %c32_95 = arith.constant 32 : index
    %109 = vector.load %arg9[%c0_94, %c32_95] : memref<4x546xf32, #tpu.memory_space<vmem>>, vector<4x512xf32>
    %c6_96 = arith.constant 6 : index
    %c0_97 = arith.constant 0 : index
    %110 = vector.load %arg7[%c6_96, %c0_97] : memref<9x512xf32, #tpu.memory_space<vmem>>, vector<1x512xf32>
    %111 = vector.broadcast %110 : vector<1x512xf32> to vector<4x512xf32>
    %112 = arith.mulf %109, %111 : vector<4x512xf32>
    %c24_98 = arith.constant 24 : index
    %c0_99 = arith.constant 0 : index
    %113 = vector.load %arg10[%c24_98, %c0_99] : memref<36x512xf32, #tpu.memory_space<vmem>>, vector<4x512xf32>
    tpu.vector_store %arg10[%c24_98, %c0_99], %112 {strides = array<i32>} : memref<36x512xf32, #tpu.memory_space<vmem>>, vector<4x512xf32>,
    %c0_100 = arith.constant 0 : index
    %c33_101 = arith.constant 33 : index
    %114 = vector.load %arg9[%c0_100, %c33_101] : memref<4x546xf32, #tpu.memory_space<vmem>>, vector<4x512xf32>
    %c7_102 = arith.constant 7 : index
    %c0_103 = arith.constant 0 : index
    %115 = vector.load %arg7[%c7_102, %c0_103] : memref<9x512xf32, #tpu.memory_space<vmem>>, vector<1x512xf32>
    %116 = vector.broadcast %115 : vector<1x512xf32> to vector<4x512xf32>
    %117 = arith.mulf %114, %116 : vector<4x512xf32>
    %c28_104 = arith.constant 28 : index
    %c0_105 = arith.constant 0 : index
    %118 = vector.load %arg10[%c28_104, %c0_105] : memref<36x512xf32, #tpu.memory_space<vmem>>, vector<4x512xf32>
    tpu.vector_store %arg10[%c28_104, %c0_105], %117 {strides = array<i32>} : memref<36x512xf32, #tpu.memory_space<vmem>>, vector<4x512xf32>,
    %c0_106 = arith.constant 0 : index
    %c34_107 = arith.constant 34 : index
    %119 = vector.load %arg9[%c0_106, %c34_107] : memref<4x546xf32, #tpu.memory_space<vmem>>, vector<4x512xf32>
    %c8_108 = arith.constant 8 : index
    %c0_109 = arith.constant 0 : index
    %120 = vector.load %arg7[%c8_108, %c0_109] : memref<9x512xf32, #tpu.memory_space<vmem>>, vector<1x512xf32>
    %121 = vector.broadcast %120 : vector<1x512xf32> to vector<4x512xf32>
    %122 = arith.mulf %119, %121 : vector<4x512xf32>
    %c32_110 = arith.constant 32 : index
    %c0_111 = arith.constant 0 : index
    %123 = vector.load %arg10[%c32_110, %c0_111] : memref<36x512xf32, #tpu.memory_space<vmem>>, vector<4x512xf32>
    tpu.vector_store %arg10[%c32_110, %c0_111], %122 {strides = array<i32>} : memref<36x512xf32, #tpu.memory_space<vmem>>, vector<4x512xf32>,
    %c0_112 = arith.constant 0 : index
    %c0_113 = arith.constant 0 : index
    %124 = vector.load %arg2[%c0_112, %c0_113] : memref<4x36xf32, #tpu.memory_space<vmem>>, vector<4x36xf32>
    %c0_114 = arith.constant 0 : index
    %c0_115 = arith.constant 0 : index
    %125 = vector.load %arg10[%c0_114, %c0_115] : memref<36x512xf32, #tpu.memory_space<vmem>>, vector<36x512xf32>
    %cst_116 = arith.constant dense<0.000000e+00> : vector<4x512xf32>
    %126 = tpu.matmul %124, %125, %cst_116 {dimension_numbers = #tpu.dot_dimension_numbers<[1], [0], [0], [1], [0, 0, 1, 1], [], []>} : vector<4x36xf32>, vector<36x512xf32>, vector<4x512xf32> -> vector<4x512xf32>
    %127 = arith.addf %126, %2 : vector<4x512xf32>
    %cst_117 = arith.constant 0.000000e+00 : f32
    %128 = vector.broadcast %cst_117 : f32 to vector<4x512xf32>
    %129 = arith.maximumf %127, %128 : vector<4x512xf32>
    %cst_118 = arith.constant dense<0.000000e+00> : vector<4xf32>
    %130 = vector.multi_reduction <add>, %129, %cst_118 [1] : vector<4x512xf32> to vector<4xf32>
    %131 = vector.shape_cast %130 : vector<4xf32> to vector<4x1xf32>
    %132 = arith.mulf %129, %129 : vector<4x512xf32>
    %cst_119 = arith.constant dense<0.000000e+00> : vector<4xf32>
    %133 = vector.multi_reduction <add>, %132, %cst_119 [1] : vector<4x512xf32> to vector<4xf32>
    %134 = vector.shape_cast %133 : vector<4xf32> to vector<4x1xf32>
    %cst_120 = arith.constant 0.001953125 : f32
    %135 = vector.broadcast %cst_120 : f32 to vector<4x1xf32>
    %136 = arith.mulf %131, %135 : vector<4x1xf32>
    %cst_121 = arith.constant 0.001953125 : f32
    %137 = vector.broadcast %cst_121 : f32 to vector<4x1xf32>
    %138 = arith.mulf %134, %137 : vector<4x1xf32>
    %139 = arith.mulf %136, %136 : vector<4x1xf32>
    %140 = arith.subf %138, %139 : vector<4x1xf32>
    %c0_122 = arith.constant 0 : index
    %c0_123 = arith.constant 0 : index
    %141 = vector.load %arg5[%c0_122, %c0_123] : memref<4x1xf32, #tpu.memory_space<vmem>>, vector<4x1xf32>
    %142 = vector.broadcast %136 : vector<4x1xf32> to vector<4x512xf32>
    %143 = arith.subf %129, %142 : vector<4x512xf32>
    %144 = vector.broadcast %141 : vector<4x1xf32> to vector<4x512xf32>
    %145 = arith.mulf %144, %143 : vector<4x512xf32>
    %cst_124 = arith.constant 9.99999974E-6 : f32
    %146 = vector.broadcast %cst_124 : f32 to vector<4x1xf32>
    %147 = arith.addf %140, %146 : vector<4x1xf32>
    %148 = math.rsqrt %147 : vector<4x1xf32>
    %149 = vector.broadcast %148 : vector<4x1xf32> to vector<4x512xf32>
    %150 = arith.mulf %145, %149 : vector<4x512xf32>
    %c0_125 = arith.constant 0 : index
    %c0_126 = arith.constant 0 : index
    %151 = vector.load %arg6[%c0_125, %c0_126] : memref<4x1xf32, #tpu.memory_space<vmem>>, vector<4x1xf32>
    %152 = vector.broadcast %151 : vector<4x1xf32> to vector<4x512xf32>
    %153 = arith.addf %150, %152 : vector<4x512xf32>
    %c0_127 = arith.constant 0 : index
    %c0_128 = arith.constant 0 : index
    %154 = vector.load %arg8[%c0_127, %c0_128] : memref<4x512xf32, #tpu.memory_space<vmem>>, vector<4x512xf32>
    tpu.vector_store %arg8[%c0_127, %c0_128], %153 {strides = array<i32>} : memref<4x512xf32, #tpu.memory_space<vmem>>, vector<4x512xf32>,
    return
  }
}

</mosaic_0001>

<bundles_post_ra>
// kernel: tpu_custom_call.1
= control target key start
LH: loop header
LB: loop body
LE: loop exit
PB: predicated region body
PF: predicated region fallthrough
CT: control target
= control target key end

     0   :  { %13 = vsyncpa [#allocation5], 0  ;;  %s2628_s0 = inlined_call_operand.vmem [shape: f32[4,512], index: 0, kind: input, shape index: {}]   ;;  %s2629_s1 = inlined_call_operand.vmem [shape: f32[4,36], index: 1, kind: input, shape index: {}]   ;;  %s2630_s2 = inlined_call_operand.vmem [shape: f32[4,36], index: 2, kind: input, shape index: {}]   ;;  %s2631_s3 = inlined_call_operand.vmem [shape: f32[4,1], index: 3, kind: input, shape index: {}]   ;;  %s2632_s4 = inlined_call_operand.vmem [shape: f32[4,1], index: 4, kind: input, shape index: {}]   ;;  %s2633_s5 = inlined_call_operand.vmem [shape: f32[4,1], index: 5, kind: input, shape index: {}]   ;;  %s2634_s6 = inlined_call_operand.vmem [shape: f32[4,1], index: 6, kind: input, shape index: {}]   ;;  %s2635_s7 = inlined_call_operand.hbm [shape: f32[9,512], index: 7, kind: input, shape index: {}]   ;;  %s2636_s8 = inlined_call_operand.hbm [shape: f32[4,512], index: 8, kind: output, shape index: {}]  }
   0x1   :  { %14 = vsyncpa [#allocation6], 0  ;;  %s1864_s27 = smov [#allocation4]   ;;  %s1816_s9 = scalar_lea.hbm %s2635_s7, 1024 }
   0x2   :  { %s34_s28 = sshll.u32 %s1864_s27, 4  ;;  %p1817_p0 = scmp.ne.s32.totalorder %s2635_s7, %s1816_s9  ;;  %s35_s28 = int_to_ptr.vmem [resolvable:$true] %s34_s28 }
   0x3   :  { %p1820_p1 = scmp.lt.u32.totalorder %s1816_s9, %s2635_s7 }
   0x5   :  { %p1822_p2 = pnand %p1820_p1, %p1817_p0 }
   0x7   :  { %1825 = shalt.err (!%p1822_p2)
}
   0x8   :  { %s1826_s14 = scalar_lea.vmem %s35_s28, 1024  ;;  %p1831_p4 = scmp.lt.s32.totalorder %s35_s28, %s35_s28 }
   0x9   :  { %p1827_p3 = scmp.ne.s32.totalorder %s35_s28, %s1826_s14  ;;  %p1832_p5 = scmp.lt.s32.totalorder %s1826_s14, %s1826_s14 }
   0xb   :  { %p1833_p6 = por %p1832_p5, %p1831_p4 }
   0xd   :  { %p1834_p7 = pnand %p1833_p6, %p1827_p3 }
   0xf   :  { %1837 = shalt.err (!%p1834_p7)
}
  0x10   :  { %s1865_s15 = smov 512   ;;  %s1866_s16 = smov 32  }
  0x11   :  { %40 = dma.hbm_to_vmem [thread:$0]  %s2635_s7, 1024, %s35_s28, [#allocation5], %s1865_s15, %s1865_s15, %s1866_s16  }
  0x12   :  { %1860 = dma.done.wait [#allocation5], 1024  }
  0x13   :  { %1861 = vsyncadd [#allocation5], 4294966272  ;;  %v77_v0 = vlaneseq  ;;  %v1867_v1 = vmov 0.0   ;;  %vm46_vm0 = vcmask 273408   ;;  %v48_v7 = vld [vmem:[%s2628_s0] sm:$0xff]  ;;  %s1868_s20 = smov 17  }
  0x14   :  { %44 = vst [vmem:[#allocation2] sm:$0xff] %v1867_v1  ;;  %757 = vmatprep.mubr.f32.mxu0 %v1867_v1  ;;  %828 = vmatprep.mubr.f32.mxu1 %v1867_v1  ;;  %47 = vst.msk [vmem:[#allocation2 + $0x10] sm:$0xf] %vm46_vm0, %v1867_v1  ;;  %v113_v8 = vld [vmem:[#allocation4 + $0x1] ss:$8 sm:$0xf] }
  0x15   :  { %v78_v2 = vshrl.u32 %v77_v0, 7  ;;  %52 = vrot.lane.b32.xlu0 %v48_v7, %s1868_s20  ;;  %v250_v13 = vld [vmem:[#allocation4 + $0x3] ss:$8 sm:$0xf]  ;;  %s1869_s23 = smov 1   ;;  %s1870_s24 = smov 16  }
  0x16   :  { %v49_v14 = vld [vmem:[%s2628_s0 + $0x8] sm:$0xff]  ;;  %s1871_s25 = smov 2   ;;  %s1872_s26 = smov 18   ;;  %vm66_vm1 = vcmask 1043592   ;;  %vm67_vm2 = vcmask 1047556   ;;  %vm58_vm3 = vcmask 138240  }
  0x17   :  { %v1947_v3 = vsub.s32 0, %v78_v2  ;;  %v1949_v4 = vsub.s32 1, %v78_v2  ;;  %v1951_v5 = vsub.s32 2, %v78_v2  ;;  %v1953_v6 = vsub.s32 3, %v78_v2  ;;  %s1873_s27 = smov 33   ;;  %s1874_s28 = smov 34   ;;  %vm2011_vm4 = vmor %vm67_vm2, %vm66_vm1 }
  0x18   :  { %v182_v17 = vld [vmem:[#allocation4 + $0x2] ss:$8 sm:$0xf]  ;;  %v386_v25 = vld [vmem:[#allocation4 + $0x5] ss:$8 sm:$0xf] }
  0x19   :  { %v118_v9 = vrot.slane %v113_v8, %v1947_v3  ;;  %v122_v10 = vrot.slane %v113_v8, %v1949_v4  ;;  %v126_v11 = vrot.slane %v113_v8, %v1951_v5  ;;  %v130_v12 = vrot.slane %v113_v8, %v1953_v6  ;;  %54 = vrot.lane.b32.xlu0 %v49_v14, %s1868_s20  ;;  %v523_v32 = vld [vmem:[#allocation4 + $0x7] ss:$8 sm:$0xf]  ;;  %v319_v39 = vld [vmem:[#allocation4 + $0x4] ss:$8 sm:$0xf] }
  0x1a   :  { %v255_v15 = vrot.slane %v250_v13, %v1947_v3  ;;  %v259_v16 = vrot.slane %v250_v13, %v1949_v4  ;;  %v263_v20 = vrot.slane %v250_v13, %v1951_v5  ;;  %v267_v21 = vrot.slane %v250_v13, %v1953_v6  ;;  %v455_v46 = vld [vmem:[#allocation4 + $0x6] ss:$8 sm:$0xf]  ;;  %v592_v53 = vld [vmem:[#allocation4 + $0x20] ss:$8 sm:$0xf] }
  0x1b   :  { %v131_v18 = vcombine.low %v118_v9, %v122_v10  ;;  %v132_v19 = vcombine.low %v126_v11, %v130_v12  ;;  %v187_v23 = vrot.slane %v182_v17, %v1947_v3  ;;  %v191_v24 = vrot.slane %v182_v17, %v1949_v4  ;;  %v75_v2 = vld [vmem:[#allocation4] ss:$8 sm:$0xf]  ;;  %s1875_s29 = smov 126   ;;  %s1876_s30 = smov 110  }
  0x1c   :  { %v268_v22 = vcombine.low %v255_v15, %v259_v16  ;;  %v269_v26 = vcombine.low %v263_v20, %v267_v21  ;;  %v195_v27 = vrot.slane %v182_v17, %v1951_v5  ;;  %v199_v28 = vrot.slane %v182_v17, %v1953_v6  ;;  %s1877_s9 = smov 95   ;;  %s1878_s10 = smov 111  }
  0x1d   :  { %133 = vrot.lane.b32.xlu1 %v131_v18, %s1869_s23  ;;  %v200_v29 = vcombine.low %v187_v23, %v191_v24  ;;  %v391_v30 = vrot.slane %v386_v25, %v1947_v3  ;;  %v395_v31 = vrot.slane %v386_v25, %v1949_v4  ;;  %v399_v34 = vrot.slane %v386_v25, %v1951_v5  ;;  %s1879_s11 = smov 96   ;;  %s1880_s12 = smov 127  }
  0x1e   :  { %270 = vrot.lane.b32.xlu0 %v268_v22, %s1870_s24  ;;  %v201_v33 = vcombine.low %v195_v27, %v199_v28  ;;  %v403_v35 = vrot.slane %v386_v25, %v1953_v6  ;;  %v528_v37 = vrot.slane %v523_v32, %v1947_v3  ;;  %v532_v38 = vrot.slane %v523_v32, %v1949_v4  ;;  %s1881_s13 = smov 112   ;;  %s1882_s14 = smov 94  }
  0x1f   :  { %v404_v36 = vcombine.low %v391_v30, %v395_v31  ;;  %v536_v41 = vrot.slane %v523_v32, %v1951_v5  ;;  %v540_v42 = vrot.slane %v523_v32, %v1953_v6  ;;  %v324_v44 = vrot.slane %v319_v39, %v1947_v3 }
  0x20   :  { %v405_v40 = vcombine.low %v399_v34, %v403_v35  ;;  %v541_v43 = vcombine.low %v528_v37, %v532_v38  ;;  %v328_v45 = vrot.slane %v319_v39, %v1949_v4  ;;  %v460_v48 = vrot.slane %v455_v46, %v1947_v3 }
  0x21   :  { %135 = vrot.lane.b32.xlu1 %v132_v19, %s1869_s23  ;;  %v542_v47 = vcombine.low %v536_v41, %v540_v42  ;;  %v464_v49 = vrot.slane %v455_v46, %v1949_v4  ;;  %v332_v51 = vrot.slane %v319_v39, %v1951_v5  ;;  %v336_v52 = vrot.slane %v319_v39, %v1953_v6 }
  0x22   :  { %202 = vrot.lane.b32.xlu0 %v200_v29, %s1871_s25  ;;  %v337_v50 = vcombine.low %v324_v44, %v328_v45  ;;  %v468_v55 = vrot.slane %v455_v46, %v1951_v5  ;;  %v472_v56 = vrot.slane %v455_v46, %v1953_v6  ;;  %v597_v58 = vrot.slane %v592_v53, %v1947_v3 }
  0x23   :  { %v473_v54 = vcombine.low %v460_v48, %v464_v49  ;;  %v338_v57 = vcombine.low %v332_v51, %v336_v52  ;;  %v601_v59 = vrot.slane %v592_v53, %v1949_v4  ;;  %v605_v60 = vrot.slane %v592_v53, %v1951_v5 }
  0x24   :  { %v474_v61 = vcombine.low %v468_v55, %v472_v56  ;;  %v609_v63 = vrot.slane %v592_v53, %v1953_v6  ;;  %v88_v10 = vrot.slane %v75_v2, %v1951_v5  ;;  %v92_v11 = vrot.slane %v75_v2, %v1953_v6 }
  0x25   :  { %272 = vrot.lane.b32.xlu1 %v269_v26, %s1870_s24  ;;  %v610_v62 = vcombine.low %v597_v58, %v601_v59  ;;  %vm60_vm5 = vcmask 1043456   ;;  %vm71_vm6 = vcmask 134144   ;;  %v80_v15 = vrot.slane %v75_v2, %v1947_v3 }
  0x26   :  { %406 = vrot.lane.b32.xlu0 %v404_v36, %s1872_s26  ;;  %v611_v0 = vcombine.low %v605_v60, %v609_v63  ;;  %v84_v16 = vrot.slane %v75_v2, %v1949_v4  ;;  %v94_v18 = vcombine.low %v88_v10, %v92_v11  ;;  %vm208_vm7 = vcmask 15360  }
  0x27   :  { %vm412_vm8 = vcmask 146432   ;;  %vm549_vm9 = vcmask 269312   ;;  %vm481_vm10 = vcmask 261120   ;;  %vm139_vm11 = vcmask 7168  }
  0x28   :  { %v93_v23 = vcombine.low %v80_v15, %v84_v16  ;;  %vm276_vm12 = vcmask 130048   ;;  %vm2637_vm13 = vcmask 277504   ;;  %vm165_vm14 = vcmask 1039360  }
  0x29   :  { %204 = vrot.lane.b32.xlu1 %v201_v33, %s1871_s25  ;;  %vm302_vm15 = vcmask 916480   ;;  %vm2639_vm0 = vcmask 908288   ;;  %vm506_vm1 = vcmask 785408   ;;  %vm438_vm2 = vcmask 900096  }
  0x2a   :  { %543 = vrot.lane.b32.xlu0 %v541_v43, %s1873_s27 }
  0x2d   :  { %408 = vrot.lane.b32.xlu1 %v405_v40, %s1872_s26 }
  0x2e   :  { %339 = vrot.lane.b32.xlu0 %v337_v50, %s1868_s20 }
  0x31   :  { %545 = vrot.lane.b32.xlu1 %v542_v47, %s1873_s27 }
  0x32   :  { %341 = vrot.lane.b32.xlu0 %v338_v57, %s1868_s20 }
  0x35   :  { %475 = vrot.lane.b32.xlu1 %v473_v54, %s1866_s16 }
  0x36   :  { %612 = vrot.lane.b32.xlu0 %v610_v62, %s1874_s28 }
  0x39   :  { %477 = vrot.lane.b32.xlu1 %v474_v61, %s1866_s16 }
  0x3d   :  { %614 = vrot.lane.b32.xlu1 %v611_v0, %s1874_s28 }
  0x87   :  { %v53_v7 = vpop.permute.xlu0 %52 }
  0x88   :  { %v56_v9 = vrot.slane %v53_v7, 4 }
  0x8a   :  { %v59_v12 = vsel %vm58_vm3, %v56_v9, %v53_v7 }
  0x8b   :  { %69 = vst.msk [vmem:[#allocation2] sm:$0xff] %vm2011_vm4, %v59_v12  ;;  %v55_v14 = vpop.permute.xlu0 %54 }
  0x8c   :  { %v57_v17 = vrot.slane %v55_v14, 4 }
  0x8e   :  { %v61_v19 = vsel %vm60_vm5, %v56_v9, %v57_v17  ;;  %72 = vst.msk [vmem:[#allocation2 + $0x10] sm:$0xf] %vm71_vm6, %v57_v17 }
  0x8f   :  { %v2020_v13 = vpop.permute.xlu1 %133  ;;  %v2027_v20 = vsel %vm58_vm3, %v61_v19, %v55_v14 }
  0x90   :  { %v2031_v22 = vpop.permute.xlu0 %270  ;;  %v98_v24 = vmul.f32 %v94_v18, %v2027_v20  ;;  %v137_v61 = vrot.slane %v2020_v13, 4 }
  0x91   :  { %v274_v12 = vrot.slane %v2031_v22, 4 }
  0x92   :  { %v2034_v25 = vld [vmem:[#allocation2] sm:$0xff]  ;;  %v102_v26 = vcombine.high %v98_v24, %v98_v24  ;;  %107 = vst [vmem:[#allocation3 + $0x10] sm:$0xf] %v98_v24  ;;  %v140_v16 = vsel %vm139_vm11, %v137_v61, %v2020_v13 }
  0x93   :  { %v2029_v21 = vpop.permute.xlu1 %135  ;;  %v97_v29 = vmul.f32 %v2034_v25, %v93_v23  ;;  %v146_v19 = vmul.f32 %v2034_v25, %v140_v16  ;;  %v277_v23 = vsel %vm276_vm12, %v274_v12, %v2031_v22 }
  0x94   :  { %v203_v28 = vpop.permute.xlu0 %202  ;;  %108 = vst [vmem:[#allocation3 + $0x18] sm:$0xf] %v102_v26  ;;  %v138_v56 = vrot.slane %v2029_v21, 4 }
  0x95   :  { %v206_v30 = vrot.slane %v203_v28, 4  ;;  %v101_v31 = vcombine.high %v97_v29, %v97_v29  ;;  %105 = vst [vmem:[#allocation3] sm:$0xf] %v97_v29  ;;  %v180_v38 = vld [vmem:[#allocation2 + $0x10] sm:$0xf]  ;;  %v283_v29 = vmul.f32 %v277_v23, %v2034_v25 }
  0x96   :  { %v317_v58 = vld [vmem:[#allocation2 + $0x10] sm:$0xf]  ;;  %v141_v7 = vsel %vm60_vm5, %v137_v61, %v138_v56 }
  0x97   :  { %v2036_v27 = vpop.permute.xlu1 %272  ;;  %v209_v32 = vsel %vm208_vm7, %v206_v30, %v203_v28  ;;  %106 = vst [vmem:[#allocation3 + $0x8] sm:$0xf] %v101_v31  ;;  %v453_v10 = vld [vmem:[#allocation2 + $0x10] sm:$0xf]  ;;  %v142_v15 = vsel %vm139_vm11, %v141_v7, %v2029_v21 }
  0x98   :  { %v2040_v34 = vpop.permute.xlu0 %406  ;;  %v2043_v35 = vmul.f32 %v209_v32, %v2034_v25  ;;  %v275_v9 = vrot.slane %v2036_v27, 4  ;;  %v147_v21 = vmul.f32 %v142_v15, %v2027_v20  ;;  %v111_v24 = vld [vmem:[#allocation2 + $0x10] sm:$0xf] }
  0x99   :  { %v410_v37 = vrot.slane %v2040_v34, 4  ;;  %v148_v22 = vmul.f32 %v138_v56, %v111_v24  ;;  %v248_v31 = vld [vmem:[#allocation2 + $0x10] sm:$0xf] }
  0x9a   :  { %223 = vrot.lane.b32.xlu1 %v2043_v35, %s1875_s29  ;;  %v278_v17 = vsel %vm60_vm5, %v274_v12, %v275_v9  ;;  %v153_v56 = vcombine.low %v147_v21, %v147_v21 }
  0x9b   :  { %v205_v33 = vpop.permute.xlu1 %204  ;;  %v413_v39 = vsel %vm412_vm8, %v410_v37, %v2040_v34  ;;  %v279_v26 = vsel %vm276_vm12, %v278_v17, %v2036_v27  ;;  %v285_v34 = vmul.f32 %v275_v9, %v248_v31 }
  0x9c   :  { %v207_v36 = vrot.slane %v205_v33, 4  ;;  %v2054_v42 = vpop.permute.xlu0 %543  ;;  %v2057_v43 = vmul.f32 %v413_v39, %v2034_v25 }
  0x9d   :  { %v547_v44 = vrot.slane %v2054_v42, 4  ;;  %v291_v39 = vcombine.low %v285_v34, %v285_v34 }
  0x9e   :  { %v217_v40 = vmul.f32 %v207_v36, %v180_v38  ;;  %430 = vrot.lane.b32.xlu1 %v2057_v43, %s1876_s30  ;;  %v210_v57 = vsel %vm60_vm5, %v206_v30, %v207_v36  ;;  %v284_v30 = vmul.f32 %v279_v26, %v2027_v20 }
  0x9f   :  { %v2052_v41 = vpop.permute.xlu1 %408  ;;  %v550_v45 = vsel %vm549_vm9, %v547_v44, %v2054_v42  ;;  %v211_v0 = vsel %vm208_vm7, %v210_v57, %v205_v33  ;;  %v154_v33 = vcombine.low %v148_v22, %v148_v22 }
  0xa0   :  { %231 = vrot.lane.b32.xlu0 %v217_v40, %s1875_s29  ;;  %v2069_v47 = vpop.permute.xlu0 %339  ;;  %v2072_v48 = vmul.f32 %v550_v45, %v2034_v25  ;;  %v2105_v14 = vmul.f32 %v211_v0, %v2027_v20  ;;  %v411_v18 = vrot.slane %v2052_v41, 4 }
  0xa1   :  { %v343_v49 = vrot.slane %v2069_v47, 4 }
  0xa2   :  { %567 = vrot.lane.b32.xlu1 %v2072_v48, %s1877_s9  ;;  %v414_v13 = vsel %vm60_vm5, %v410_v37, %v411_v18 }
  0xa3   :  { %v2067_v46 = vpop.permute.xlu1 %545  ;;  %v345_v50 = vsel %vm58_vm3, %v343_v49, %v2069_v47  ;;  %v415_v27 = vsel %vm412_vm8, %v414_v13, %v2052_v41 }
  0xa4   :  { %v342_v52 = vpop.permute.xlu0 %341  ;;  %v2084_v53 = vmul.f32 %v345_v50, %v2034_v25  ;;  %v548_v28 = vrot.slane %v2067_v46, 4  ;;  %v420_v36 = vmul.f32 %v415_v27, %v2027_v20 }
  0xa5   :  { %v344_v55 = vrot.slane %v342_v52, 4 }
  0xa6   :  { %359 = vrot.lane.b32.xlu1 %v2084_v53, %s1878_s10  ;;  %v551_v32 = vsel %vm60_vm5, %v547_v44, %v548_v28  ;;  %v357_v47 = vcombine.high %v2084_v53, %v2084_v53  ;;  %v221_v53 = vcombine.high %v2043_v35, %v2043_v35  ;;  %v425_v35 = vcombine.low %v2057_v43, %v2057_v43  ;;  %v521_v43 = vld [vmem:[#allocation2 + $0x10] sm:$0xf] }
  0xa7   :  { %v2081_v51 = vpop.permute.xlu1 %475  ;;  %v353_v60 = vmul.f32 %v344_v55, %v317_v58  ;;  %v552_v37 = vsel %vm549_vm9, %v551_v32, %v2067_v46  ;;  %v346_v38 = vsel %vm60_vm5, %v343_v49, %v344_v55  ;;  %v384_v49 = vld [vmem:[#allocation2 + $0x10] sm:$0xf]  ;;  %v290_v58 = vcombine.low %v284_v30, %v284_v30 }
  0xa8   :  { %v479_v54 = vrot.slane %v2081_v51, 4  ;;  %v347_v40 = vsel %vm58_vm3, %v346_v38, %v342_v52  ;;  %v557_v41 = vmul.f32 %v552_v37, %v2027_v20  ;;  %v558_v15 = vmul.f32 %v548_v28, %v521_v43 }
  0xa9   :  { %367 = vrot.lane.b32.xlu0 %v353_v60, %s1878_s10  ;;  %v352_v44 = vmul.f32 %v347_v40, %v2027_v20  ;;  %v152_v60 = vcombine.low %v146_v19, %v146_v19 }
  0xaa   :  { %v482_v59 = vsel %vm481_vm10, %v479_v54, %v2081_v51  ;;  %v421_v51 = vmul.f32 %v411_v18, %v384_v49  ;;  %v563_v12 = vcombine.low %v557_v41, %v557_v41  ;;  %v564_v17 = vcombine.low %v558_v15, %v558_v15 }
  0xab   :  { %v478_v62 = vpop.permute.xlu1 %477  ;;  %v2095_v63 = vmul.f32 %v482_v59, %v2034_v25 }
  0xac   :  { %v480_v2 = vrot.slane %v478_v62, 4  ;;  %v427_v55 = vcombine.low %v421_v51, %v421_v51 }
  0xad   :  { %496 = vrot.lane.b32.xlu1 %v2095_v63, %s1879_s11  ;;  %v494_v52 = vcombine.high %v2095_v63, %v2095_v63  ;;  %v289_v63 = vcombine.low %v283_v29, %v283_v29 }
  0xae   :  { %v490_v11 = vmul.f32 %v480_v2, %v453_v10  ;;  %v483_v42 = vsel %vm60_vm5, %v479_v54, %v480_v2  ;;  %v613_v54 = vpop.permute.xlu0 %612  ;;  %v358_v2 = vcombine.high %v352_v44, %v352_v44  ;;  %v426_v10 = vcombine.low %v420_v36, %v420_v36 }
  0xaf   :  { %v484_v45 = vsel %vm481_vm10, %v483_v42, %v478_v62  ;;  %v616_v57 = vrot.slane %v613_v54, 4  ;;  %v222_v62 = vcombine.high %v2105_v14, %v2105_v14  ;;  %v615_v9 = vpop.permute.xlu1 %614 }
  0xb0   :  { %504 = vrot.lane.b32.xlu0 %v490_v11, %s1879_s11  ;;  %v489_v50 = vmul.f32 %v484_v45, %v2027_v20  ;;  %v617_v11 = vrot.slane %v615_v9, 4 }
  0xb1   :  { %227 = vrot.lane.b32.xlu1 %v2105_v14, %s1875_s29  ;;  %v619_v59 = vsel %vm2637_vm13, %v616_v57, %v613_v54  ;;  %v590_v14 = vld [vmem:[#allocation2 + $0x10] sm:$0xf] }
  0xb2   :  { %v625_v61 = vmul.f32 %v619_v59, %v2034_v25  ;;  %v562_v25 = vcombine.low %v2072_v48, %v2072_v48  ;;  %v495_v7 = vcombine.high %v489_v50, %v489_v50  ;;  %v627_v16 = vmul.f32 %v617_v11, %v590_v14 }
  0xb3   :  { %v620_v48 = vsel %vm60_vm5, %v616_v57, %v617_v11 }
  0xb4   :  { %157 = vrot.lane.b32.xlu0 %v146_v19, %s1880_s12  ;;  %v631_v0 = vcombine.high %v625_v61, %v625_v61  ;;  %v621_v18 = vsel %vm2637_vm13, %v620_v48, %v615_v9  ;;  %vm2638_vm13 = vcmask 1031168  }
  0xb5   :  { %161 = vrot.lane.b32.xlu1 %v147_v21, %s1880_s12  ;;  %v626_v19 = vmul.f32 %v621_v18, %v2027_v20 }
  0xb7   :  { %v632_v23 = vcombine.high %v626_v19, %v626_v19 }
  0xb8   :  { %294 = vrot.lane.b32.xlu0 %v283_v29, %s1881_s13 }
  0xb9   :  { %298 = vrot.lane.b32.xlu1 %v284_v30, %s1881_s13 }
  0xbc   :  { %163 = vrot.lane.b32.xlu0 %v154_v33, %s1880_s12 }
  0xbd   :  { %434 = vrot.lane.b32.xlu1 %v420_v36, %s1876_s30 }
  0xc0   :  { %300 = vrot.lane.b32.xlu0 %v291_v39, %s1881_s13 }
  0xc1   :  { %571 = vrot.lane.b32.xlu1 %v557_v41, %s1877_s9 }
  0xc4   :  { %363 = vrot.lane.b32.xlu0 %v352_v44, %s1878_s10 }
  0xc5   :  { %361 = vrot.lane.b32.xlu1 %v357_v47, %s1878_s10 }
  0xc8   :  { %500 = vrot.lane.b32.xlu0 %v489_v50, %s1879_s11 }
  0xc9   :  { %498 = vrot.lane.b32.xlu1 %v494_v52, %s1879_s11 }
  0xcc   :  { %436 = vrot.lane.b32.xlu0 %v427_v55, %s1876_s30 }
  0xcd   :  { %159 = vrot.lane.b32.xlu1 %v153_v56, %s1880_s12 }
  0xd0   :  { %225 = vrot.lane.b32.xlu0 %v221_v53, %s1875_s29 }
  0xd1   :  { %296 = vrot.lane.b32.xlu1 %v290_v58, %s1881_s13 }
  0xd4   :  { %155 = vrot.lane.b32.xlu0 %v152_v60, %s1880_s12 }
  0xd5   :  { %229 = vrot.lane.b32.xlu1 %v222_v62, %s1875_s29 }
  0xd8   :  { %292 = vrot.lane.b32.xlu0 %v289_v63, %s1881_s13 }
  0xd9   :  { %635 = vrot.lane.b32.xlu1 %v631_v0, %s1882_s14 }
  0xdc   :  { %428 = vrot.lane.b32.xlu0 %v425_v35, %s1876_s30 }
  0xdd   :  { %365 = vrot.lane.b32.xlu1 %v358_v2, %s1878_s10 }
  0xe0   :  { %565 = vrot.lane.b32.xlu0 %v562_v25, %s1877_s9 }
  0xe1   :  { %502 = vrot.lane.b32.xlu1 %v495_v7, %s1879_s11 }
  0xe4   :  { %432 = vrot.lane.b32.xlu0 %v426_v10, %s1876_s30 }
  0xe5   :  { %633 = vrot.lane.b32.xlu1 %v625_v61, %s1882_s14 }
  0xe8   :  { %569 = vrot.lane.b32.xlu0 %v563_v12, %s1877_s9 }
  0xe9   :  { %641 = vrot.lane.b32.xlu1 %v627_v16, %s1882_s14 }
  0xec   :  { %573 = vrot.lane.b32.xlu0 %v564_v17, %s1877_s9 }
  0xf0   :  { %637 = vrot.lane.b32.xlu0 %v626_v19, %s1882_s14 }
  0xf4   :  { %639 = vrot.lane.b32.xlu0 %v632_v23, %s1882_s14 }
 0x10c   :  { %v224_v46 = vpop.permute.xlu1 %223 }
 0x110   :  { %v2197_v21 = vpop.permute.xlu1 %430 }
 0x112   :  { %v232_v26 = vpop.permute.xlu0 %231 }
 0x114   :  { %v2199_v24 = vpop.permute.xlu1 %567 }
 0x118   :  { %v360_v13 = vpop.permute.xlu1 %359 }
 0x11b   :  { %v2201_v28 = vpop.permute.xlu0 %367 }
 0x11f   :  { %v497_v29 = vpop.permute.xlu1 %496 }
 0x122   :  { %v2203_v22 = vpop.permute.xlu0 %504 }
 0x123   :  { %v228_v30 = vpop.permute.xlu1 %227 }
 0x126   :  { %v158_v31 = vpop.permute.xlu0 %157 }
 0x127   :  { %v162_v20 = vpop.permute.xlu1 %161 }
 0x12a   :  { %v295_v27 = vpop.permute.xlu0 %294 }
 0x12b   :  { %v299_v32 = vpop.permute.xlu1 %298 }
 0x12e   :  { %v164_v33 = vpop.permute.xlu0 %163 }
 0x12f   :  { %v169_v34 = vsel %vm165_vm14, %v162_v20, %v164_v33  ;;  %v2206_v36 = vpop.permute.xlu1 %434 }
 0x130   :  { %177 = vst [vmem:[#allocation3 + $0x18] sm:$0xf0] %v169_v34 }
 0x132   :  { %v301_v37 = vpop.permute.xlu0 %300 }
 0x133   :  { %v306_v38 = vsel %vm302_vm15, %v299_v32, %v301_v37  ;;  %v2209_v39 = vpop.permute.xlu1 %571 }
 0x134   :  { %314 = vst [vmem:[#allocation3 + $0x38] sm:$0xf0] %v306_v38 }
 0x136   :  { %v364_v40 = vpop.permute.xlu0 %363 }
 0x137   :  { %v362_v41 = vpop.permute.xlu1 %361  ;;  %v660_v16 = vld [vmem:[#allocation3 + $0x18] sm:$0xff] }
 0x138   :  { %v370_v42 = vsel %vm2639_vm0, %v360_v13, %v362_v41  ;;  %v371_v44 = vsel %vm2639_vm0, %v362_v41, %v364_v40 }
 0x139   :  { %378 = vst [vmem:[#allocation3 + $0x40] sm:$0xf] %v370_v42  ;;  %379 = vst [vmem:[#allocation3 + $0x48] sm:$0xf] %v371_v44 }
 0x13a   :  { %v2213_v45 = vpop.permute.xlu0 %500 }
 0x13b   :  { %v499_v47 = vpop.permute.xlu1 %498 }
 0x13c   :  { %v507_v49 = vsel %vm506_vm1, %v497_v29, %v499_v47  ;;  %v508_v50 = vsel %vm506_vm1, %v499_v47, %v2213_v45 }
 0x13d   :  { %515 = vst [vmem:[#allocation3 + $0x60] sm:$0xf] %v507_v49  ;;  %516 = vst [vmem:[#allocation3 + $0x68] sm:$0xf] %v508_v50 }
 0x13e   :  { %v437_v51 = vpop.permute.xlu0 %436 }
 0x13f   :  { %v442_v52 = vsel %vm438_vm2, %v2206_v36, %v437_v51  ;;  %v160_v54 = vpop.permute.xlu1 %159 }
 0x140   :  { %450 = vst [vmem:[#allocation3 + $0x58] sm:$0xf0] %v442_v52  ;;  %v167_v55 = vsel %vm165_vm14, %v158_v31, %v160_v54  ;;  %v168_v56 = vsel %vm165_vm14, %v160_v54, %v162_v20 }
 0x141   :  { %175 = vst [vmem:[#allocation3 + $0x8] sm:$0xf0] %v167_v55  ;;  %176 = vst [vmem:[#allocation3 + $0x10] sm:$0xf0] %v168_v56 }
 0x142   :  { %v226_v57 = vpop.permute.xlu0 %225 }
 0x143   :  { %v234_v53 = vsel %vm2638_vm13, %v224_v46, %v226_v57  ;;  %v235_v58 = vsel %vm2638_vm13, %v226_v57, %v228_v30  ;;  %v297_v59 = vpop.permute.xlu1 %296 }
 0x144   :  { %242 = vst [vmem:[#allocation3 + $0x20] sm:$0xf] %v234_v53  ;;  %243 = vst [vmem:[#allocation3 + $0x28] sm:$0xf] %v235_v58  ;;  %v304_v60 = vsel %vm302_vm15, %v295_v27, %v297_v59  ;;  %v305_v61 = vsel %vm302_vm15, %v297_v59, %v299_v32 }
 0x145   :  { %312 = vst [vmem:[#allocation3 + $0x28] sm:$0xf0] %v304_v60  ;;  %313 = vst [vmem:[#allocation3 + $0x30] sm:$0xf0] %v305_v61 }
 0x146   :  { %v156_v62 = vpop.permute.xlu0 %155 }
 0x147   :  { %v166_v63 = vsel %vm165_vm14, %v156_v62, %v158_v31  ;;  %v230_v0 = vpop.permute.xlu1 %229 }
 0x148   :  { %174 = vst [vmem:[#allocation3] sm:$0xf0] %v166_v63  ;;  %v236_v35 = vsel %vm2638_vm13, %v228_v30, %v230_v0  ;;  %v237_v2 = vsel %vm2638_vm13, %v230_v0, %v232_v26  ;;  %v658_v10 = vld [vmem:[#allocation3 + $0x8] sm:$0xff]  ;;  %vm2640_vm13 = vcmask 777216   ;;  %v659_v19 = vld [vmem:[#allocation3 + $0x10] sm:$0xff] }
 0x149   :  { %244 = vst [vmem:[#allocation3 + $0x30] sm:$0xf] %v236_v35  ;;  %245 = vst [vmem:[#allocation3 + $0x38] sm:$0xf] %v237_v2  ;;  %v656_v63 = vld [vmem:[%s2629_s1] sm:$0xf] }
 0x14a   :  { %v293_v25 = vpop.permute.xlu0 %292 }
 0x14b   :  { %v303_v7 = vsel %vm302_vm15, %v293_v25, %v295_v27  ;;  %v636_v9 = vpop.permute.xlu1 %635  ;;  %v1883_v25 = vmov 0  }
 0x14c   :  { %311 = vst [vmem:[#allocation3 + $0x20] sm:$0xf0] %v303_v7  ;;  %v662_v11 = vld [vmem:[#allocation3 + $0x28] sm:$0xff]  ;;  %1808 = vset.pattern.permute.xlu0 %v1883_v25  ;;  %1809 = vset.pattern.permute.xlu1 %v1883_v25 }
 0x14d   :  { %v1755_v43 = vpack.c.bf16 %v662_v11, %v658_v10 }
 0x14e   :  { %v429_v12 = vpop.permute.xlu0 %428 }
 0x14f   :  { %v439_v14 = vsel %vm438_vm2, %v429_v12, %v2197_v21  ;;  %v366_v15 = vpop.permute.xlu1 %365  ;;  %1756 = vmatprep.subr.bf16.mxu0 %v1755_v43  ;;  %v657_v31 = vld [vmem:[#allocation3] sm:$0xff] }
 0x150   :  { %447 = vst [vmem:[#allocation3 + $0x40] sm:$0xf0] %v439_v14  ;;  %v372_v48 = vsel %vm2639_vm0, %v364_v40, %v366_v15  ;;  %v373_v17 = vsel %vm2639_vm0, %v366_v15, %v2201_v28  ;;  %v664_v18 = vld [vmem:[#allocation3 + $0x38] sm:$0xff]  ;;  %v663_v23 = vld [vmem:[#allocation3 + $0x30] sm:$0xff]  ;;  %vm643_vm0 = vcmask 769024  }
 0x151   :  { %380 = vst [vmem:[#allocation3 + $0x50] sm:$0xf] %v372_v48  ;;  %381 = vst [vmem:[#allocation3 + $0x58] sm:$0xf] %v373_v17  ;;  %v1763_v46 = vpack.c.bf16 %v664_v18, %v660_v16  ;;  %v1765_v26 = vpack.c.bf16 %v663_v23, %v659_v19 }
 0x152   :  { %v566_v13 = vpop.permute.xlu0 %565 }
 0x153   :  { %v576_v29 = vsel %vm2640_vm13, %v566_v13, %v2199_v24  ;;  %v503_v30 = vpop.permute.xlu1 %502  ;;  %1764 = vmatprep.subr.bf16.mxu1 %v1763_v46  ;;  %v661_v20 = vld [vmem:[#allocation3 + $0x20] sm:$0xff] }
 0x154   :  { %584 = vst [vmem:[#allocation3 + $0x60] sm:$0xf0] %v576_v29  ;;  %v509_v28 = vsel %vm506_vm1, %v2213_v45, %v503_v30  ;;  %v510_v27 = vsel %vm506_vm1, %v503_v30, %v2203_v22  ;;  %1766 = vmatpush1.bf16.msra.mxu1 %v1765_v26  ;;  %v1757_v32 = vpack.c.bf16 %v661_v20, %v657_v31 }
 0x155   :  { %517 = vst [vmem:[#allocation3 + $0x70] sm:$0xf] %v509_v28  ;;  %518 = vst [vmem:[#allocation3 + $0x78] sm:$0xf] %v510_v27 }
 0x156   :  { %v433_v33 = vpop.permute.xlu0 %432  ;;  %1758 = vmatpush1.bf16.msra.mxu0 %v1757_v32 }
 0x157   :  { %v440_v34 = vsel %vm438_vm2, %v2197_v21, %v433_v33  ;;  %v441_v37 = vsel %vm438_vm2, %v433_v33, %v2206_v36  ;;  %v634_v38 = vpop.permute.xlu1 %633  ;;  %v665_v52 = vld [vmem:[#allocation3 + $0x40] sm:$0xff] }
 0x158   :  { %448 = vst [vmem:[#allocation3 + $0x48] sm:$0xf0] %v440_v34  ;;  %449 = vst [vmem:[#allocation3 + $0x50] sm:$0xf0] %v441_v37  ;;  %v644_v40 = vsel %vm643_vm0, %v634_v38, %v636_v9 }
 0x159   :  { %652 = vst [vmem:[#allocation3 + $0x80] sm:$0xf] %v644_v40  ;;  %v955_v34 = vld [vmem:[#allocation4 + $0x1] ss:$8 sm:$0xf] }
 0x15a   :  { %v570_v22 = vpop.permute.xlu0 %569  ;;  %v960_v37 = vrot.slane %v955_v34, %v1947_v3  ;;  %v964_v38 = vrot.slane %v955_v34, %v1949_v4  ;;  %v885_v40 = vld [vmem:[%s2632_s4] sm:$0xf] }
 0x15b   :  { %v577_v41 = vsel %vm2640_vm13, %v2199_v24, %v570_v22  ;;  %v578_v42 = vsel %vm2640_vm13, %v570_v22, %v2209_v39  ;;  %v669_v45 = vld [vmem:[#allocation3 + $0x60] sm:$0xff]  ;;  %v642_v54 = vpop.permute.xlu1 %641 }
 0x15c   :  { %585 = vst [vmem:[#allocation3 + $0x68] sm:$0xf0] %v577_v41  ;;  %586 = vst [vmem:[#allocation3 + $0x70] sm:$0xf0] %v578_v42  ;;  %v1761_v24 = vpack.c.bf16 %v669_v45, %v665_v52  ;;  %v972_v45 = vrot.slane %v955_v34, %v1953_v6 }
 0x15d   :  { %v1021_v22 = vld [vmem:[#allocation4 + $0x2] ss:$8 sm:$0xf] }
 0x15e   :  { %v574_v44 = vpop.permute.xlu0 %573  ;;  %v1026_v41 = vrot.slane %v1021_v22, %v1947_v3  ;;  %v1030_v42 = vrot.slane %v1021_v22, %v1949_v4 }
 0x15f   :  { %v579_v21 = vsel %vm2640_vm13, %v2209_v39, %v574_v44  ;;  %v666_v49 = vld [vmem:[#allocation3 + $0x48] sm:$0xff]  ;;  %v668_v39 = vld [vmem:[#allocation3 + $0x58] sm:$0xff]  ;;  %v667_v60 = vld [vmem:[#allocation3 + $0x50] sm:$0xff]  ;;  %vm677_vm13 = vcmask 293888  }
 0x160   :  { %587 = vst [vmem:[#allocation3 + $0x78] sm:$0xf0] %v579_v21  ;;  %v673_v0 = vld [vmem:[#allocation3 + $0x80] sm:$0xf]  ;;  %v865_v44 = vld [vmem:[%s2631_s3] sm:$0xf]  ;;  %v973_v21 = vcombine.low %v960_v37, %v964_v38 }
 0x162   :  { %v638_v36 = vpop.permute.xlu0 %637 }
 0x163   :  { %v645_v47 = vsel %vm643_vm0, %v636_v9, %v638_v36  ;;  %v670_v50 = vld [vmem:[#allocation3 + $0x68] sm:$0xff]  ;;  %v671_v56 = vld [vmem:[#allocation3 + $0x70] sm:$0xff] }
 0x164   :  { %653 = vst [vmem:[#allocation3 + $0x88] sm:$0xf] %v645_v47  ;;  %v1759_v51 = vpack.c.bf16 %v670_v50, %v666_v49  ;;  %v1769_v61 = vpack.c.bf16 %v671_v56, %v667_v60  ;;  %v1086_v47 = vld [vmem:[#allocation4 + $0x3] ss:$8 sm:$0xf]  ;;  %v1039_v50 = vcombine.low %v1026_v41, %v1030_v42 }
 0x165   :  { %v1217_v49 = vld [vmem:[#allocation4 + $0x5] ss:$8 sm:$0xf]  ;;  %v1348_v56 = vld [vmem:[#allocation4 + $0x7] ss:$8 sm:$0xf]  ;;  %v1103_v60 = vrot.slane %v1086_v47, %v1953_v6 }
 0x166   :  { %v640_v55 = vpop.permute.xlu0 %639  ;;  %1760 = vmatprep.subr.bf16.mxu0 %v1759_v51  ;;  %v1222_v51 = vrot.slane %v1217_v49, %v1947_v3  ;;  %v1226_v52 = vrot.slane %v1217_v49, %v1949_v4 }
 0x167   :  { %v646_v57 = vsel %vm643_vm0, %v638_v36, %v640_v55  ;;  %v647_v53 = vsel %vm643_vm0, %v640_v55, %v642_v54  ;;  %1762 = vmatpush1.bf16.msra.mxu0 %v1761_v24  ;;  %v672_v58 = vld [vmem:[#allocation3 + $0x78] sm:$0xff]  ;;  %v968_v36 = vrot.slane %v955_v34, %v1951_v5  ;;  %v1091_v54 = vrot.slane %v1086_v47, %v1947_v3 }
 0x168   :  { %654 = vst [vmem:[#allocation3 + $0x90] sm:$0xf] %v646_v57  ;;  %655 = vst [vmem:[#allocation3 + $0x98] sm:$0xf] %v647_v53  ;;  %v1767_v59 = vpack.c.bf16 %v672_v58, %v668_v39  ;;  %v1095_v55 = vrot.slane %v1086_v47, %v1949_v4  ;;  %v1235_v57 = vcombine.low %v1222_v51, %v1226_v52 }
 0x169   :  { %v974_v24 = vcombine.low %v968_v36, %v972_v45  ;;  %v1353_v53 = vrot.slane %v1348_v56, %v1947_v3  ;;  %v1357_v39 = vrot.slane %v1348_v56, %v1949_v4 }
 0x16a   :  { %1768 = vmatprep.subr.bf16.mxu1 %v1767_v59  ;;  %v1104_v58 = vcombine.low %v1091_v54, %v1095_v55  ;;  %v1099_v59 = vrot.slane %v1086_v47, %v1951_v5 }
 0x16b   :  { %1770 = vmatpush1.bf16.msra.mxu1 %v1769_v61  ;;  %v674_v62 = vld [vmem:[#allocation3 + $0x88] sm:$0xf]  ;;  %v1366_v61 = vcombine.low %v1353_v53, %v1357_v39 }
 0x16c   :  { %1743 = vmatprep.subr.msk.mxu0 %vm60_vm5, %v674_v62  ;;  %v1105_v62 = vcombine.low %v1099_v59, %v1103_v60 }
 0x16d   :  { %1744 = vmatpush1.msk.msra.mxu0 %vm60_vm5, %v673_v0  ;;  %v1038_v0 = vrot.slane %v1021_v22, %v1953_v6 }
 0x16e   :  { %1745 = vmatmul.mubr.msk.f32.vlgmr.msra.gmra.mrb[0].mxu0 %vm677_vm13, %v656_v63 }
 0x16f   :  { %v676_v35 = vld [vmem:[#allocation3 + $0x98] sm:$0xf]  ;;  %v675_v2 = vld [vmem:[#allocation3 + $0x90] sm:$0xf]  ;;  %1580 = vmatprep.mubr.f32.mxu0 %v1867_v1 }
 0x170   :  { %1746 = vmatprep.subr.msk.mxu1 %vm60_vm5, %v676_v35  ;;  %v1230_v35 = vrot.slane %v1217_v49, %v1951_v5 }
 0x171   :  { %1747 = vmatpush1.msk.msra.mxu1 %vm60_vm5, %v675_v2  ;;  %v1234_v2 = vrot.slane %v1217_v49, %v1953_v6 }
 0x172   :  { %1748 = vmatmul.mubr.msk.f32.vlgmr.msra.gmra.mrb[0].mxu1 %vm677_vm13, %v656_v63  ;;  %v1034_v63 = vrot.slane %v1021_v22, %v1951_v5 }
 0x173   :  { %1651 = vmatprep.mubr.f32.mxu1 %v1867_v1 }
 0x174   :  { %v1040_v25 = vcombine.low %v1034_v63, %v1038_v0 }
 0x241   :  { %v759_v7 = vpop.f32.mrb[0].mxu0 }
 0x242   :  { %v2266_v9 = vmax.f32 %v759_v7, 0.0  ;;  %v761_v10 = vpop.f32.mrb[1].mxu0  ;;  %v1152_v7 = vld [vmem:[#allocation4 + $0x4] ss:$8 sm:$0xf] }
 0x243   :  { %v2268_v11 = vmax.f32 %v761_v10, 0.0  ;;  %v1157_v10 = vrot.slane %v1152_v7, %v1947_v3 }
 0x244   :  { %v839_v43 = vsel %vm60_vm5, %v2266_v9, 0.0  ;;  %v848_v12 = vmul.f32 %v2266_v9, %v2266_v9 }
 0x245   :  { %v840_v14 = vsel %vm60_vm5, %v2268_v11, 0.0  ;;  %v849_v1 = vmul.f32 %v2268_v11, %v2268_v11  ;;  %v830_v15 = vpop.f32.mrb[0].mxu1 }
 0x246   :  { %v2278_v16 = vmax.f32 %v830_v15, 0.0  ;;  %v832_v48 = vpop.f32.mrb[1].mxu1  ;;  %v841_v17 = vadd.f32 %v840_v14, %v839_v43  ;;  %v852_v18 = vsel %vm60_vm5, %v848_v12, 0.0  ;;  %v1161_v43 = vrot.slane %v1152_v7, %v1949_v4 }
 0x247   :  { %v2281_v19 = vmax.f32 %v832_v48, 0.0  ;;  %v853_v23 = vsel %vm60_vm5, %v849_v1, 0.0  ;;  %v1236_v12 = vcombine.low %v1230_v35, %v1234_v2  ;;  %v1361_v1 = vrot.slane %v1348_v56, %v1951_v5 }
 0x248   :  { %v850_v46 = vmul.f32 %v2278_v16, %v2278_v16  ;;  %v842_v26 = vsel %vm60_vm5, %v2278_v16, 0.0  ;;  %v854_v13 = vadd.f32 %v853_v23, %v852_v18  ;;  %v1170_v14 = vcombine.low %v1157_v10, %v1161_v43  ;;  %v1283_v18 = vld [vmem:[#allocation4 + $0x6] ss:$8 sm:$0xf] }
 0x249   :  { %v843_v29 = vadd.f32 %v842_v26, %v841_v17  ;;  %v844_v30 = vsel %vm60_vm5, %v2281_v19, 0.0  ;;  %v851_v31 = vmul.f32 %v2281_v19, %v2281_v19  ;;  %v1365_v15 = vrot.slane %v1348_v56, %v1953_v6 }
 0x24a   :  { %v855_v20 = vsel %vm60_vm5, %v850_v46, 0.0  ;;  %v1165_v48 = vrot.slane %v1152_v7, %v1951_v5  ;;  %v1169_v17 = vrot.slane %v1152_v7, %v1953_v6  ;;  %v1288_v26 = vrot.slane %v1283_v18, %v1947_v3 }
 0x24b   :  { %v845_v28 = vadd.f32 %v844_v30, %v843_v29  ;;  %v856_v27 = vadd.f32 %v855_v20, %v854_v13  ;;  %v857_v32 = vsel %vm60_vm5, %v851_v31, 0.0  ;;  %v1367_v46 = vcombine.low %v1361_v1, %v1365_v15  ;;  %v1414_v29 = vld [vmem:[#allocation4 + $0x20] ss:$8 sm:$0xf] }
 0x24c   :  { %v1171_v23 = vcombine.low %v1165_v48, %v1169_v17  ;;  %v1292_v13 = vrot.slane %v1283_v18, %v1949_v4  ;;  %v1419_v30 = vrot.slane %v1414_v29, %v1947_v3  ;;  %v1423_v31 = vrot.slane %v1414_v29, %v1949_v4 }
 0x24d   :  { %846 = vadd.xlane.f32.xlu0 %v845_v28  ;;  %v858_v33 = vadd.f32 %v857_v32, %v856_v27  ;;  %v1427_v59 = vrot.slane %v1414_v29, %v1951_v5  ;;  %v1431_v60 = vrot.slane %v1414_v29, %v1953_v6 }
 0x24e   :  { %v1432_v20 = vcombine.low %v1419_v30, %v1423_v31  ;;  %v1301_v28 = vcombine.low %v1288_v26, %v1292_v13 }
 0x24f   :  { %859 = vadd.xlane.f32.xlu1 %v858_v33 }
 0x260   :  { %888 = vperm.xlu1 %1809, %v885_v40  }
 0x263   :  { %872 = vperm.xlu0 %1808, %v865_v44  }
 0x264   :  { %975 = vrot.lane.b32.xlu1 %v973_v21, %s1869_s23 }
 0x267   :  { %1041 = vrot.lane.b32.xlu0 %v1039_v50, %s1871_s25 }
 0x268   :  { %977 = vrot.lane.b32.xlu1 %v974_v24, %s1869_s23 }
 0x26b   :  { %1237 = vrot.lane.b32.xlu0 %v1235_v57, %s1872_s26 }
 0x26c   :  { %1106 = vrot.lane.b32.xlu1 %v1104_v58, %s1870_s24 }
 0x26f   :  { %1368 = vrot.lane.b32.xlu0 %v1366_v61, %s1873_s27  ;;  %v1433_v61 = vcombine.low %v1427_v59, %v1431_v60 }
 0x270   :  { %1108 = vrot.lane.b32.xlu1 %v1105_v62, %s1870_s24 }
 0x273   :  { %1172 = vrot.lane.b32.xlu0 %v1170_v14, %s1868_s20  ;;  %v918_v14 = vld [vmem:[#allocation4] ss:$8 sm:$0xf] }
 0x274   :  { %1043 = vrot.lane.b32.xlu1 %v1040_v25, %s1871_s25  ;;  %v931_v48 = vrot.slane %v918_v14, %v1951_v5  ;;  %v935_v17 = vrot.slane %v918_v14, %v1953_v6 }
 0x276   :  { %v937_v13 = vcombine.low %v931_v48, %v935_v17 }
 0x277   :  { %1174 = vrot.lane.b32.xlu0 %v1171_v23, %s1868_s20 }
 0x278   :  { %1239 = vrot.lane.b32.xlu1 %v1236_v12, %s1872_s26 }
 0x27b   :  { %1434 = vrot.lane.b32.xlu0 %v1432_v20, %s1874_s28 }
 0x27c   :  { %1370 = vrot.lane.b32.xlu1 %v1367_v46, %s1873_s27 }
 0x280   :  { %1303 = vrot.lane.b32.xlu1 %v1301_v28, %s1866_s16 }
 0x2da   :  { %v847_v27 = vpop.xlane.xlu0 %846 }
 0x2db   :  { %v861_v32 = vmul.f32 0.001953125, %v847_v27 }
 0x2dc   :  { %v860_v33 = vpop.xlane.xlu1 %859 }
 0x2dd   :  { %v862_v34 = vmul.f32 0.001953125, %v860_v33  ;;  %v863_v37 = vmul.f32 %v861_v32, %v861_v32  ;;  %v866_v41 = vsub.f32 %v2266_v9, %v861_v32  ;;  %v867_v42 = vsub.f32 %v2268_v11, %v861_v32 }
 0x2de   :  { %v868_v44 = vsub.f32 %v2278_v16, %v861_v32  ;;  %v869_v21 = vsub.f32 %v2281_v19, %v861_v32  ;;  %v1296_v11 = vrot.slane %v1283_v18, %v1951_v5  ;;  %v1300_v16 = vrot.slane %v1283_v18, %v1953_v6 }
 0x2df   :  { %v864_v38 = vsub.f32 %v862_v34, %v863_v37  ;;  %v923_v32 = vrot.slane %v918_v14, %v1947_v3  ;;  %v927_v33 = vrot.slane %v918_v14, %v1949_v4 }
 0x2e0   :  { %v889_v51 = vpop.permute.xlu1 %888  ;;  %v1302_v58 = vcombine.low %v1296_v11, %v1300_v16 }
 0x2e1   :  { %v879_v40 = vadd.f32 1e-05, %v864_v38 }
 0x2e2   :  { %v873_v22 = vpop.permute.xlu0 %872 }
 0x2e3   :  { %1810 = vrsqrt.f32 %v879_v40  ;;  %v875_v36 = vmul.f32 %v873_v22, %v866_v41  ;;  %v876_v45 = vmul.f32 %v873_v22, %v867_v42  ;;  %v877_v47 = vmul.f32 %v873_v22, %v868_v44 }
 0x2e4   :  { %v878_v49 = vmul.f32 %v873_v22, %v869_v21  ;;  %v2354_v62 = vpop.permute.xlu1 %975  ;;  %v936_v42 = vcombine.low %v923_v32, %v927_v33 }
 0x2e6   :  { %v2368_v10 = vpop.permute.xlu0 %1041 }
 0x2e7   :  { %v1045_v5 = vrot.slane %v2368_v10, 4 }
 0x2e8   :  { %v2356_v63 = vpop.permute.xlu1 %977 }
 0x2e9   :  { %v1047_v8 = vsel %vm208_vm7, %v1045_v5, %v2368_v10 }
 0x2ea   :  { %v2372_v12 = vpop.permute.xlu0 %1237 }
 0x2eb   :  { %v1241_v27 = vrot.slane %v2372_v12, 4 }
 0x2ec   :  { %v2358_v0 = vpop.permute.xlu1 %1106 }
 0x2ed   :  { %v1811_v50 = vpop.eup %1810  ;;  %v1243_v37 = vsel %vm412_vm8, %v1241_v27, %v2372_v12  ;;  %v1110_v11 = vrot.slane %v2358_v0, 4 }
 0x2ee   :  { %v881_v52 = vmul.f32 %v1811_v50, %v875_v36  ;;  %v882_v24 = vmul.f32 %v1811_v50, %v876_v45  ;;  %v883_v54 = vmul.f32 %v1811_v50, %v877_v47  ;;  %v884_v55 = vmul.f32 %v1811_v50, %v878_v49  ;;  %v2379_v46 = vpop.permute.xlu0 %1368 }
 0x2ef   :  { %v1372_v3 = vrot.slane %v2379_v46, 4 }
 0x2f0   :  { %v891_v56 = vadd.f32 %v889_v51, %v881_v52  ;;  %v892_v57 = vadd.f32 %v889_v51, %v882_v24  ;;  %v893_v53 = vadd.f32 %v889_v51, %v883_v54  ;;  %v894_v9 = vadd.f32 %v889_v51, %v884_v55  ;;  %v2360_v35 = vpop.permute.xlu1 %1108 }
 0x2f1   :  { %v1374_v21 = vsel %vm549_vm9, %v1372_v3, %v2379_v46  ;;  %v979_v55 = vrot.slane %v2354_v62, 4  ;;  %v1111_v10 = vrot.slane %v2360_v35, 4 }
 0x2f2   :  { %v899_v39 = vcombine.low %v891_v56, %v892_v57  ;;  %v900_v19 = vcombine.low %v893_v53, %v894_v9  ;;  %v2387_v6 = vpop.permute.xlu0 %1172 }
 0x2f3   :  { %v1176_v36 = vrot.slane %v2387_v6, 4 }
 0x2f4   :  { %901 = vrot.lane.b32.xlu1 %v899_v39, %s1868_s20  ;;  %v2362_v2 = vpop.permute.xlu1 %1043  ;;  %v981_v39 = vsel %vm139_vm11, %v979_v55, %v2354_v62  ;;  %v1112_v62 = vsel %vm276_vm12, %v1110_v11, %v2358_v0 }
 0x2f5   :  { %v1046_v34 = vrot.slane %v2362_v2, 4  ;;  %v1178_v50 = vsel %vm58_vm3, %v1176_v36, %v2387_v6 }
 0x2f6   :  { %v2407_v38 = vpop.permute.xlu0 %1174 }
 0x2f7   :  { %v1177_v44 = vrot.slane %v2407_v38, 4 }
 0x2f8   :  { %903 = vrot.lane.b32.xlu1 %v900_v19, %s1868_s20  ;;  %v2364_v25 = vpop.permute.xlu1 %1239  ;;  %v980_v19 = vrot.slane %v2356_v63, 4 }
 0x2fa   :  { %v982_v14 = vsel %vm60_vm5, %v979_v55, %v980_v19 }
 0x2fb   :  { %v983_v0 = vsel %vm139_vm11, %v982_v14, %v2356_v63 }
 0x2fc   :  { %1305 = vrot.lane.b32.xlu1 %v1302_v58, %s1866_s16  ;;  %v2366_v7 = vpop.permute.xlu1 %1370  ;;  %v1048_v58 = vsel %vm60_vm5, %v1045_v5, %v1046_v34 }
 0x2fd   :  { %v1373_v6 = vrot.slane %v2366_v7, 4 }
 0x2ff   :  { %v1375_v12 = vsel %vm60_vm5, %v1372_v3, %v1373_v6 }
 0x300   :  { %1436 = vrot.lane.b32.xlu1 %v1433_v61, %s1874_s28  ;;  %v2370_v43 = vpop.permute.xlu1 %1303 }
 0x301   :  { %v1307_v56 = vrot.slane %v2370_v43, 4 }
 0x303   :  { %v1309_v16 = vsel %vm481_vm10, %v1307_v56, %v2370_v43  ;;  %v1049_v43 = vsel %vm208_vm7, %v1048_v58, %v2362_v2 }
 0x366   :  { %v902_v1 = vpop.permute.xlu1 %901 }
 0x367   :  { %v905_v15 = vrot.slane %v902_v1, 4 }
 0x369   :  { %v907_v18 = vsel %vm58_vm3, %v905_v15, %v902_v1 }
 0x36a   :  { %913 = vst.msk [vmem:[#allocation2] sm:$0xff] %vm2011_vm4, %v907_v18  ;;  %v904_v23 = vpop.permute.xlu1 %903  ;;  %v1113_v18 = vsel %vm60_vm5, %v1110_v11, %v1111_v10 }
 0x36b   :  { %v906_v26 = vrot.slane %v904_v23, 4  ;;  %v1114_v5 = vsel %vm276_vm12, %v1113_v18, %v2360_v35  ;;  %vm2651_vm12 = vcmask 777216  }
 0x36d   :  { %v908_v29 = vsel %vm60_vm5, %v905_v15, %v906_v26  ;;  %915 = vst.msk [vmem:[#allocation2 + $0x10] sm:$0xf] %vm71_vm6, %v906_v26  ;;  %vm2645_vm6 = vcmask 908288  }
 0x36e   :  { %v2384_v30 = vsel %vm58_vm3, %v908_v29, %v904_v23  ;;  %v2422_v45 = vpop.permute.xlu1 %1305  ;;  %v1242_v23 = vrot.slane %v2364_v25, 4  ;;  %v1179_v29 = vsel %vm60_vm5, %v1176_v36, %v1177_v44  ;;  %vm2646_vm7 = vmmov %vm2645_vm6 }
 0x36f   :  { %v941_v31 = vmul.f32 %v937_v13, %v2384_v30  ;;  %v1308_v24 = vrot.slane %v2422_v45, 4  ;;  %v1054_v15 = vmul.f32 %v1049_v43, %v2384_v30  ;;  %v988_v26 = vmul.f32 %v983_v0, %v2384_v30 }
 0x370   :  { %v1244_v63 = vsel %vm60_vm5, %v1241_v27, %v1242_v23  ;;  %v1180_v32 = vsel %vm58_vm3, %v1179_v29, %v2407_v38  ;;  %vm2643_vm3 = vcmask 277504  }
 0x371   :  { %v2392_v20 = vld [vmem:[#allocation2] sm:$0xff]  ;;  %950 = vst [vmem:[#allocation3 + $0x10] sm:$0xf] %v941_v31  ;;  %v945_v54 = vcombine.high %v941_v31, %v941_v31  ;;  %v1310_v33 = vsel %vm60_vm5, %v1307_v56, %v1308_v24  ;;  %v1245_v35 = vsel %vm412_vm8, %v1244_v63, %v2364_v25  ;;  %v1185_v27 = vmul.f32 %v1180_v32, %v2384_v30  ;;  %vm2644_vm4 = vmmov %vm2643_vm3 }
 0x372   :  { %v2395_v28 = vmul.f32 %v2392_v20, %v1047_v8  ;;  %v2410_v41 = vmul.f32 %v1243_v37, %v2392_v20  ;;  %v2425_v49 = vmul.f32 %v1374_v21, %v2392_v20  ;;  %v940_v52 = vmul.f32 %v2392_v20, %v936_v42  ;;  %v1437_v56 = vpop.permute.xlu1 %1436 }
 0x373   :  { %v1184_v53 = vmul.f32 %v1178_v50, %v2392_v20  ;;  %951 = vst [vmem:[#allocation3 + $0x18] sm:$0xf] %v945_v54  ;;  %v987_v59 = vmul.f32 %v2392_v20, %v981_v39  ;;  %v1315_v60 = vmul.f32 %v1309_v16, %v2392_v20  ;;  %v1118_v1 = vmul.f32 %v2392_v20, %v1112_v62 }
 0x374   :  { %1061 = vrot.lane.b32.xlu1 %v2395_v28, %s1875_s29  ;;  %v1020_v40 = vld [vmem:[#allocation2 + $0x10] sm:$0xf]  ;;  %v944_v57 = vcombine.high %v940_v52, %v940_v52  ;;  %948 = vst [vmem:[#allocation3] sm:$0xf] %v940_v52  ;;  %v1119_v8 = vmul.f32 %v1114_v5, %v2384_v30  ;;  %v1311_v37 = vsel %vm481_vm10, %v1310_v33, %v2422_v45  ;;  %vm2647_vm8 = vcmask 1031168  }
 0x375   :  { %v1055_v22 = vmul.f32 %v1046_v34, %v1020_v40  ;;  %v1151_v4 = vld [vmem:[#allocation2 + $0x10] sm:$0xf]  ;;  %v1250_v34 = vmul.f32 %v1245_v35, %v2384_v30  ;;  %v1376_v40 = vsel %vm549_vm9, %v1375_v12, %v2366_v7  ;;  %v1316_v25 = vmul.f32 %v1311_v37, %v2384_v30  ;;  %v1435_v7 = vpop.permute.xlu0 %1434  ;;  %vm2648_vm9 = vmmov %vm2647_vm8 }
 0x376   :  { %v1186_v47 = vmul.f32 %v1177_v44, %v1151_v4  ;;  %v1282_v51 = vld [vmem:[#allocation2 + $0x10] sm:$0xf]  ;;  %949 = vst [vmem:[#allocation3 + $0x8] sm:$0xf] %v944_v57  ;;  %v1381_v46 = vmul.f32 %v1376_v40, %v2384_v30  ;;  %v1190_v3 = vcombine.high %v1184_v53, %v1184_v53  ;;  %v1321_v42 = vcombine.high %v1315_v60, %v1315_v60  ;;  %vm2649_vm10 = vmmov %vm2647_vm8 }
 0x377   :  { %1069 = vrot.lane.b32.xlu0 %v1055_v22, %s1875_s29  ;;  %v1317_v9 = vmul.f32 %v1308_v24, %v1282_v51  ;;  %v954_v61 = vld [vmem:[#allocation2 + $0x10] sm:$0xf]  ;;  %v1059_v44 = vcombine.high %v2395_v28, %v2395_v28  ;;  %v993_v21 = vcombine.low %v987_v59, %v987_v59  ;;  %v994_v36 = vcombine.low %v988_v26, %v988_v26  ;;  %vm2650_vm11 = vmmov %vm2647_vm8 }
 0x378   :  { %1260 = vrot.lane.b32.xlu1 %v2410_v41, %s1876_s30  ;;  %v989_v48 = vmul.f32 %v980_v19, %v954_v61  ;;  %v1085_v17 = vld [vmem:[#allocation2 + $0x10] sm:$0xf]  ;;  %v1438_v45 = vrot.slane %v1435_v7, 4  ;;  %v1125_v50 = vcombine.low %v1119_v8, %v1119_v8  ;;  %v1255_v52 = vcombine.low %v2410_v41, %v2410_v41 }
 0x379   :  { %v1120_v13 = vmul.f32 %v1111_v10, %v1085_v17  ;;  %v1216_v38 = vld [vmem:[#allocation2 + $0x10] sm:$0xf]  ;;  %v1060_v24 = vcombine.high %v1054_v15, %v1054_v15  ;;  %v1386_v55 = vcombine.low %v2425_v49, %v2425_v49  ;;  %v1191_v57 = vcombine.high %v1185_v27, %v1185_v27 }
 0x37a   :  { %v995_v2 = vcombine.low %v989_v48, %v989_v48  ;;  %v1251_v22 = vmul.f32 %v1242_v23, %v1216_v38  ;;  %v1440_v51 = vsel %vm2643_vm3, %v1438_v45, %v1435_v7  ;;  %v1322_v41 = vcombine.high %v1316_v25, %v1316_v25  ;;  %v1413_v19 = vld [vmem:[#allocation2 + $0x10] sm:$0xf] }
 0x37b   :  { %1200 = vrot.lane.b32.xlu0 %v1186_v47, %s1878_s10  ;;  %v1126_v31 = vcombine.low %v1120_v13, %v1120_v13  ;;  %v1124_v47 = vcombine.low %v1118_v1, %v1118_v1  ;;  %v1446_v28 = vmul.f32 %v1440_v51, %v2392_v20  ;;  %v1347_v20 = vld [vmem:[#allocation2 + $0x10] sm:$0xf]  ;;  %v1387_v39 = vcombine.low %v1381_v46, %v1381_v46 }
 0x37c   :  { %1391 = vrot.lane.b32.xlu1 %v2425_v49, %s1877_s9  ;;  %v1257_v4 = vcombine.low %v1251_v22, %v1251_v22  ;;  %v1382_v11 = vmul.f32 %v1373_v6, %v1347_v20 }
 0x37d   :  { %v1452_v54 = vcombine.high %v1446_v28, %v1446_v28 }
 0x37e   :  { %v1388_v49 = vcombine.low %v1382_v11, %v1382_v11 }
 0x37f   :  { %1331 = vrot.lane.b32.xlu0 %v1317_v9, %s1879_s11  ;;  %v1439_v9 = vrot.slane %v1437_v56, 4 }
 0x380   :  { %1192 = vrot.lane.b32.xlu1 %v1184_v53, %s1878_s10  ;;  %v1256_v53 = vcombine.low %v1250_v34, %v1250_v34 }
 0x381   :  { %v1441_v16 = vsel %vm60_vm5, %v1438_v45, %v1439_v9 }
 0x382   :  { %v1442_v58 = vsel %vm2644_vm4, %v1441_v16, %v1437_v56 }
 0x383   :  { %998 = vrot.lane.b32.xlu0 %v987_v59, %s1880_s12  ;;  %v1447_v59 = vmul.f32 %v1442_v58, %v2384_v30 }
 0x384   :  { %1323 = vrot.lane.b32.xlu1 %v1315_v60, %s1879_s11  ;;  %v1448_v60 = vmul.f32 %v1439_v9, %v1413_v19 }
 0x385   :  { %v1453_v61 = vcombine.high %v1447_v59, %v1447_v59 }
 0x387   :  { %1129 = vrot.lane.b32.xlu0 %v1118_v1, %s1881_s13 }
 0x388   :  { %1065 = vrot.lane.b32.xlu1 %v1054_v15, %s1875_s29 }
 0x38b   :  { %1004 = vrot.lane.b32.xlu0 %v995_v2, %s1880_s12 }
 0x38c   :  { %1002 = vrot.lane.b32.xlu1 %v988_v26, %s1880_s12 }
 0x38f   :  { %1135 = vrot.lane.b32.xlu0 %v1126_v31, %s1881_s13 }
 0x390   :  { %1133 = vrot.lane.b32.xlu1 %v1119_v8, %s1881_s13 }
 0x393   :  { %1196 = vrot.lane.b32.xlu0 %v1185_v27, %s1878_s10 }
 0x394   :  { %1264 = vrot.lane.b32.xlu1 %v1250_v34, %s1876_s30 }
 0x397   :  { %1327 = vrot.lane.b32.xlu0 %v1316_v25, %s1879_s11 }
 0x398   :  { %1395 = vrot.lane.b32.xlu1 %v1381_v46, %s1877_s9 }
 0x39b   :  { %1266 = vrot.lane.b32.xlu0 %v1257_v4, %s1876_s30 }
 0x39c   :  { %1194 = vrot.lane.b32.xlu1 %v1190_v3, %s1878_s10 }
 0x39f   :  { %1063 = vrot.lane.b32.xlu0 %v1059_v44, %s1875_s29 }
 0x3a0   :  { %1325 = vrot.lane.b32.xlu1 %v1321_v42, %s1879_s11 }
 0x3a3   :  { %996 = vrot.lane.b32.xlu0 %v993_v21, %s1880_s12 }
 0x3a4   :  { %1000 = vrot.lane.b32.xlu1 %v994_v36, %s1880_s12 }
 0x3a7   :  { %1127 = vrot.lane.b32.xlu0 %v1124_v47, %s1881_s13 }
 0x3a8   :  { %1131 = vrot.lane.b32.xlu1 %v1125_v50, %s1881_s13 }
 0x3ab   :  { %1258 = vrot.lane.b32.xlu0 %v1255_v52, %s1876_s30 }
 0x3ac   :  { %1067 = vrot.lane.b32.xlu1 %v1060_v24, %s1875_s29 }
 0x3af   :  { %1389 = vrot.lane.b32.xlu0 %v1386_v55, %s1877_s9 }
 0x3b0   :  { %1456 = vrot.lane.b32.xlu1 %v1452_v54, %s1882_s14 }
 0x3b3   :  { %1262 = vrot.lane.b32.xlu0 %v1256_v53, %s1876_s30 }
 0x3b4   :  { %1198 = vrot.lane.b32.xlu1 %v1191_v57, %s1878_s10 }
 0x3b7   :  { %1393 = vrot.lane.b32.xlu0 %v1387_v39, %s1877_s9 }
 0x3b8   :  { %1329 = vrot.lane.b32.xlu1 %v1322_v41, %s1879_s11 }
 0x3bb   :  { %1397 = vrot.lane.b32.xlu0 %v1388_v49, %s1877_s9 }
 0x3bc   :  { %1454 = vrot.lane.b32.xlu1 %v1446_v28, %s1882_s14 }
 0x3bf   :  { %1458 = vrot.lane.b32.xlu0 %v1447_v59, %s1882_s14 }
 0x3c0   :  { %1462 = vrot.lane.b32.xlu1 %v1448_v60, %s1882_s14 }
 0x3c3   :  { %1460 = vrot.lane.b32.xlu0 %v1453_v61, %s1882_s14 }
 0x3e6   :  { %v1062_v62 = vpop.permute.xlu1 %1061 }
 0x3e9   :  { %v1070_v10 = vpop.permute.xlu0 %1069 }
 0x3ea   :  { %v2529_v43 = vpop.permute.xlu1 %1260 }
 0x3ed   :  { %v2531_v14 = vpop.permute.xlu0 %1200 }
 0x3ee   :  { %v2533_v1 = vpop.permute.xlu1 %1391 }
 0x3f1   :  { %v2535_v15 = vpop.permute.xlu0 %1331 }
 0x3f2   :  { %v1193_v48 = vpop.permute.xlu1 %1192 }
 0x3f5   :  { %v999_v30 = vpop.permute.xlu0 %998 }
 0x3f6   :  { %v1324_v17 = vpop.permute.xlu1 %1323 }
 0x3f9   :  { %v1130_v0 = vpop.permute.xlu0 %1129 }
 0x3fa   :  { %v1066_v18 = vpop.permute.xlu1 %1065 }
 0x3fd   :  { %v1005_v23 = vpop.permute.xlu0 %1004 }
 0x3fe   :  { %v1003_v2 = vpop.permute.xlu1 %1002 }
 0x3ff   :  { %v1009_v26 = vsel %vm165_vm14, %v1003_v2, %v1005_v23 }
 0x400   :  { %1017 = vst [vmem:[#allocation3 + $0x18] sm:$0xf0] %v1009_v26 }
 0x401   :  { %v1136_v13 = vpop.permute.xlu0 %1135 }
 0x402   :  { %v1134_v29 = vpop.permute.xlu1 %1133 }
 0x403   :  { %v1140_v5 = vsel %vm302_vm15, %v1134_v29, %v1136_v13 }
 0x404   :  { %1148 = vst [vmem:[#allocation3 + $0x38] sm:$0xf0] %v1140_v5 }
 0x405   :  { %v2539_v63 = vpop.permute.xlu0 %1196 }
 0x406   :  { %v1265_v6 = vpop.permute.xlu1 %1264 }
 0x407   :  { %v1480_v49 = vld [vmem:[#allocation3 + $0x18] sm:$0xff] }
 0x409   :  { %v2541_v31 = vpop.permute.xlu0 %1327 }
 0x40a   :  { %v2543_v8 = vpop.permute.xlu1 %1395 }
 0x40d   :  { %v1267_v32 = vpop.permute.xlu0 %1266 }
 0x40e   :  { %v1195_v33 = vpop.permute.xlu1 %1194  ;;  %v1271_v35 = vsel %vm438_vm2, %v1265_v6, %v1267_v32 }
 0x40f   :  { %v1202_v12 = vsel %vm2645_vm6, %v1193_v48, %v1195_v33  ;;  %v1203_v27 = vsel %vm2646_vm7, %v1195_v33, %v2539_v63  ;;  %1279 = vst [vmem:[#allocation3 + $0x58] sm:$0xf0] %v1271_v35 }
 0x410   :  { %1210 = vst [vmem:[#allocation3 + $0x40] sm:$0xf] %v1202_v12  ;;  %1211 = vst [vmem:[#allocation3 + $0x48] sm:$0xf] %v1203_v27 }
 0x411   :  { %v1064_v34 = vpop.permute.xlu0 %1063 }
 0x412   :  { %v1326_v37 = vpop.permute.xlu1 %1325  ;;  %v1071_v38 = vsel %vm2647_vm8, %v1062_v62, %v1064_v34  ;;  %v1072_v40 = vsel %vm2648_vm9, %v1064_v34, %v1066_v18 }
 0x413   :  { %v1333_v25 = vsel %vm506_vm1, %v1324_v17, %v1326_v37  ;;  %v1334_v46 = vsel %vm506_vm1, %v1326_v37, %v2541_v31  ;;  %1079 = vst [vmem:[#allocation3 + $0x20] sm:$0xf] %v1071_v38  ;;  %1080 = vst [vmem:[#allocation3 + $0x28] sm:$0xf] %v1072_v40 }
 0x414   :  { %1341 = vst [vmem:[#allocation3 + $0x60] sm:$0xf] %v1333_v25  ;;  %1342 = vst [vmem:[#allocation3 + $0x68] sm:$0xf] %v1334_v46 }
 0x415   :  { %v997_v22 = vpop.permute.xlu0 %996 }
 0x416   :  { %v1001_v3 = vpop.permute.xlu1 %1000  ;;  %v1006_v4 = vsel %vm165_vm14, %v997_v22, %v999_v30 }
 0x417   :  { %v1007_v42 = vsel %vm165_vm14, %v999_v30, %v1001_v3  ;;  %v1008_v44 = vsel %vm165_vm14, %v1001_v3, %v1003_v2  ;;  %1014 = vst [vmem:[#allocation3] sm:$0xf0] %v1006_v4  ;;  %vm2652_vm14 = vmmov %vm2645_vm6  ;;  %v1476_v3 = vld [vmem:[%s2630_s2] sm:$0xf] }
 0x418   :  { %1015 = vst [vmem:[#allocation3 + $0x8] sm:$0xf0] %v1007_v42  ;;  %1016 = vst [vmem:[#allocation3 + $0x10] sm:$0xf0] %v1008_v44 }
 0x419   :  { %v1128_v7 = vpop.permute.xlu0 %1127 }
 0x41a   :  { %v1132_v21 = vpop.permute.xlu1 %1131  ;;  %v1137_v36 = vsel %vm302_vm15, %v1128_v7, %v1130_v0  ;;  %v1814_v7 = vld [vmem:[%s2628_s0] sm:$0xff] }
 0x41b   :  { %v1138_v45 = vsel %vm302_vm15, %v1130_v0, %v1132_v21  ;;  %v1139_v47 = vsel %vm302_vm15, %v1132_v21, %v1134_v29  ;;  %1145 = vst [vmem:[#allocation3 + $0x20] sm:$0xf0] %v1137_v36  ;;  %vm2653_vm15 = vmmov %vm2645_vm6  ;;  %v1497_v21 = vcombine.high %v1814_v7, %v1814_v7 }
 0x41c   :  { %1146 = vst [vmem:[#allocation3 + $0x28] sm:$0xf0] %v1138_v45  ;;  %1147 = vst [vmem:[#allocation3 + $0x30] sm:$0xf0] %v1139_v47 }
 0x41d   :  { %v1259_v50 = vpop.permute.xlu0 %1258 }
 0x41e   :  { %v1068_v51 = vpop.permute.xlu1 %1067  ;;  %v1268_v28 = vsel %vm438_vm2, %v1259_v50, %v2529_v43  ;;  %v1477_v41 = vld [vmem:[#allocation3] sm:$0xff] }
 0x41f   :  { %v1073_v52 = vsel %vm2649_vm10, %v1066_v18, %v1068_v51  ;;  %v1074_v24 = vsel %vm2650_vm11, %v1068_v51, %v1070_v10  ;;  %1276 = vst [vmem:[#allocation3 + $0x40] sm:$0xf0] %v1268_v28  ;;  %v1478_v57 = vld [vmem:[#allocation3 + $0x8] sm:$0xff]  ;;  %v1479_v62 = vld [vmem:[#allocation3 + $0x10] sm:$0xff] }
 0x420   :  { %1081 = vst [vmem:[#allocation3 + $0x30] sm:$0xf] %v1073_v52  ;;  %1082 = vst [vmem:[#allocation3 + $0x38] sm:$0xf] %v1074_v24  ;;  %v1815_v51 = vld [vmem:[%s2628_s0 + $0x8] sm:$0xff] }
 0x421   :  { %v1390_v54 = vpop.permute.xlu0 %1389  ;;  %v1498_v28 = vcombine.high %v1815_v51, %v1815_v51 }
 0x422   :  { %v1457_v55 = vpop.permute.xlu1 %1456  ;;  %v1399_v56 = vsel %vm2651_vm12, %v1390_v54, %v2533_v1  ;;  %v1481_v20 = vld [vmem:[#allocation3 + $0x20] sm:$0xff] }
 0x423   :  { %v1482_v53 = vld [vmem:[#allocation3 + $0x28] sm:$0xff]  ;;  %1407 = vst [vmem:[#allocation3 + $0x60] sm:$0xf0] %v1399_v56  ;;  %v1773_v39 = vpack.c.bf16 %v1481_v20, %v1477_v41 }
 0x424   :  { %v1771_v9 = vpack.c.bf16 %v1482_v53, %v1478_v57 }
 0x425   :  { %v1263_v11 = vpop.permute.xlu0 %1262 }
 0x426   :  { %v1199_v16 = vpop.permute.xlu1 %1198  ;;  %1772 = vmatprep.subr.bf16.mxu0 %v1771_v9  ;;  %v1269_v19 = vsel %vm438_vm2, %v2529_v43, %v1263_v11  ;;  %v1270_v58 = vsel %vm438_vm2, %v1263_v11, %v1265_v6  ;;  %vm2654_vm2 = vmmov %vm2651_vm12  ;;  %v1485_v32 = vld [vmem:[#allocation3 + $0x40] sm:$0xff] }
 0x427   :  { %v1204_v59 = vsel %vm2652_vm14, %v2539_v63, %v1199_v16  ;;  %v1205_v60 = vsel %vm2653_vm15, %v1199_v16, %v2531_v14  ;;  %1774 = vmatpush1.bf16.msra.mxu0 %v1773_v39  ;;  %v1484_v61 = vld [vmem:[#allocation3 + $0x38] sm:$0xff]  ;;  %v1483_v10 = vld [vmem:[#allocation3 + $0x30] sm:$0xff]  ;;  %1277 = vst [vmem:[#allocation3 + $0x48] sm:$0xf0] %v1269_v19  ;;  %1278 = vst [vmem:[#allocation3 + $0x50] sm:$0xf0] %v1270_v58 }
 0x428   :  { %1212 = vst [vmem:[#allocation3 + $0x50] sm:$0xf] %v1204_v59  ;;  %1213 = vst [vmem:[#allocation3 + $0x58] sm:$0xf] %v1205_v60  ;;  %v1779_v48 = vpack.c.bf16 %v1484_v61, %v1480_v49  ;;  %v1781_v30 = vpack.c.bf16 %v1483_v10, %v1479_v62 }
 0x429   :  { %v1394_v17 = vpop.permute.xlu0 %1393  ;;  %vm2655_vm3 = vmmov %vm2654_vm2 }
 0x42a   :  { %v1330_v43 = vpop.permute.xlu1 %1329  ;;  %1780 = vmatprep.subr.bf16.mxu1 %v1779_v48  ;;  %v1400_v0 = vsel %vm2654_vm2, %v2533_v1, %v1394_v17  ;;  %v1401_v18 = vsel %vm2655_vm3, %v1394_v17, %v2543_v8  ;;  %vm2656_vm4 = vmmov %vm2654_vm2  ;;  %v1489_v5 = vld [vmem:[#allocation3 + $0x60] sm:$0xff] }
 0x42b   :  { %v1335_v14 = vsel %vm506_vm1, %v2541_v31, %v1330_v43  ;;  %v1336_v23 = vsel %vm506_vm1, %v1330_v43, %v2535_v15  ;;  %1782 = vmatpush1.bf16.msra.mxu1 %v1781_v30  ;;  %1408 = vst [vmem:[#allocation3 + $0x68] sm:$0xf0] %v1400_v0  ;;  %1409 = vst [vmem:[#allocation3 + $0x70] sm:$0xf0] %v1401_v18  ;;  %v1777_v33 = vpack.c.bf16 %v1489_v5, %v1485_v32  ;;  %v1708_v18 = vld [vmem:[%s2634_s6] sm:$0xf] }
 0x42c   :  { %1343 = vst [vmem:[#allocation3 + $0x70] sm:$0xf] %v1335_v14  ;;  %1344 = vst [vmem:[#allocation3 + $0x78] sm:$0xf] %v1336_v23  ;;  %v1688_v14 = vld [vmem:[%s2633_s5] sm:$0xf] }
 0x42d   :  { %v1398_v2 = vpop.permute.xlu0 %1397  ;;  %s1884_s5 = smov [#allocation7]  }
 0x42e   :  { %v1455_v26 = vpop.permute.xlu1 %1454  ;;  %v1402_v13 = vsel %vm2656_vm4, %v2543_v8, %v1398_v2  ;;  %v1486_v6 = vld [vmem:[#allocation3 + $0x48] sm:$0xff]  ;;  %s1734_s6 = sshll.u32 %s1884_s5, 4  ;;  %s1735_s6 = int_to_ptr.vmem [resolvable:$true] %s1734_s6 }
 0x42f   :  { %v1464_v1 = vsel %vm643_vm0, %v1455_v26, %v1457_v55  ;;  %1410 = vst [vmem:[#allocation3 + $0x78] sm:$0xf0] %v1402_v13  ;;  %v1488_v37 = vld [vmem:[#allocation3 + $0x58] sm:$0xff]  ;;  %v1487_v25 = vld [vmem:[#allocation3 + $0x50] sm:$0xff]  ;;  %s1838_s25 = scalar_lea.vmem %s1735_s6, 256  ;;  %p1843_p9 = scmp.lt.s32.totalorder %s1735_s6, %s1735_s6 }
 0x430   :  { %1472 = vst [vmem:[#allocation3 + $0x80] sm:$0xf] %v1464_v1  ;;  %p1839_p8 = scmp.ne.s32.totalorder %s1735_s6, %s1838_s25  ;;  %p1844_p10 = scmp.lt.s32.totalorder %s1838_s25, %s1838_s25 }
 0x431   :  { %v1459_v29 = vpop.permute.xlu0 %1458 }
 0x432   :  { %v1465_v63 = vsel %vm643_vm0, %v1457_v55, %v1459_v29  ;;  %v1490_v15 = vld [vmem:[#allocation3 + $0x68] sm:$0xff]  ;;  %v1463_v35 = vpop.permute.xlu1 %1462  ;;  %p1845_p11 = por %p1844_p10, %p1843_p9 }
 0x433   :  { %1473 = vst [vmem:[#allocation3 + $0x88] sm:$0xf] %v1465_v63  ;;  %v1775_v31 = vpack.c.bf16 %v1490_v15, %v1486_v6  ;;  %v1491_v27 = vld [vmem:[#allocation3 + $0x70] sm:$0xff] }
 0x434   :  { %v1785_v46 = vpack.c.bf16 %v1491_v27, %v1487_v25  ;;  %p1846_p12 = pnand %p1845_p11, %p1839_p8 }
 0x435   :  { %1776 = vmatprep.subr.bf16.mxu0 %v1775_v31  ;;  %v1461_v12 = vpop.permute.xlu0 %1460 }
 0x436   :  { %v1466_v8 = vsel %vm643_vm0, %v1459_v29, %v1461_v12  ;;  %v1467_v34 = vsel %vm643_vm0, %v1461_v12, %v1463_v35  ;;  %1778 = vmatpush1.bf16.msra.mxu0 %v1777_v33  ;;  %v1492_v38 = vld [vmem:[#allocation3 + $0x78] sm:$0xff] }
 0x437   :  { %1474 = vst [vmem:[#allocation3 + $0x90] sm:$0xf] %v1466_v8  ;;  %1475 = vst [vmem:[#allocation3 + $0x98] sm:$0xf] %v1467_v34  ;;  %v1783_v40 = vpack.c.bf16 %v1492_v38, %v1488_v37  ;;  %v1493_v4 = vld [vmem:[#allocation3 + $0x80] sm:$0xf] }
 0x439   :  { %1784 = vmatprep.subr.bf16.mxu1 %v1783_v40 }
 0x43a   :  { %1786 = vmatpush1.bf16.msra.mxu1 %v1785_v46  ;;  %v1494_v22 = vld [vmem:[#allocation3 + $0x88] sm:$0xf] }
 0x43b   :  { %1749 = vmatprep.subr.msk.mxu0 %vm60_vm5, %v1494_v22 }
 0x43c   :  { %1750 = vmatpush1.msk.msra.mxu0 %vm60_vm5, %v1493_v4 }
 0x43d   :  { %1751 = vmatmul.mubr.msk.f32.vlgmr.msra.gmra.mrb[2].mxu0 %vm677_vm13, %v1476_v3 }
 0x43e   :  { %v1496_v42 = vld [vmem:[#allocation3 + $0x98] sm:$0xf]  ;;  %v1495_v44 = vld [vmem:[#allocation3 + $0x90] sm:$0xf] }
 0x43f   :  { %1752 = vmatprep.subr.msk.mxu1 %vm60_vm5, %v1496_v42 }
 0x440   :  { %1753 = vmatpush1.msk.msra.mxu1 %vm60_vm5, %v1495_v44 }
 0x441   :  { %1754 = vmatmul.mubr.msk.f32.vlgmr.msra.gmra.mrb[2].mxu1 %vm677_vm13, %v1476_v3 }
 0x510   :  { %v1582_v36 = vpop.f32.mrb[2].mxu0 }
 0x511   :  { %v1583_v45 = vadd.f32 %v1814_v7, %v1582_v36  ;;  %v1584_v47 = vpop.f32.mrb[3].mxu0 }
 0x512   :  { %v1585_v50 = vadd.f32 %v1584_v47, %v1497_v21 }
 0x513   :  { %v1658_v52 = vmax.f32 %v1583_v45, 0.0 }
 0x514   :  { %v1659_v24 = vmax.f32 %v1585_v50, 0.0  ;;  %v1653_v54 = vpop.f32.mrb[2].mxu1 }
 0x515   :  { %v1662_v55 = vsel %vm60_vm5, %v1658_v52, 0.0  ;;  %v1671_v56 = vmul.f32 %v1658_v52, %v1658_v52  ;;  %v1654_v57 = vadd.f32 %v1815_v51, %v1653_v54  ;;  %v1655_v53 = vpop.f32.mrb[3].mxu1 }
 0x516   :  { %v1663_v20 = vsel %vm60_vm5, %v1659_v24, 0.0  ;;  %v1672_v9 = vmul.f32 %v1659_v24, %v1659_v24  ;;  %v1656_v41 = vadd.f32 %v1655_v53, %v1498_v28 }
 0x517   :  { %v1675_v39 = vsel %vm60_vm5, %v1671_v56, 0.0  ;;  %v1664_v11 = vadd.f32 %v1663_v20, %v1662_v55  ;;  %v1660_v16 = vmax.f32 %v1654_v57, 0.0 }
 0x518   :  { %v1676_v49 = vsel %vm60_vm5, %v1672_v9, 0.0  ;;  %v1661_v19 = vmax.f32 %v1656_v41, 0.0 }
 0x519   :  { %v1665_v58 = vsel %vm60_vm5, %v1660_v16, 0.0  ;;  %v1673_v59 = vmul.f32 %v1660_v16, %v1660_v16  ;;  %v1677_v60 = vadd.f32 %v1676_v49, %v1675_v39 }
 0x51a   :  { %v1674_v61 = vmul.f32 %v1661_v19, %v1661_v19  ;;  %v1666_v62 = vadd.f32 %v1665_v58, %v1664_v11  ;;  %v1667_v10 = vsel %vm60_vm5, %v1661_v19, 0.0 }
 0x51b   :  { %v1678_v48 = vsel %vm60_vm5, %v1673_v59, 0.0 }
 0x51c   :  { %v1668_v30 = vadd.f32 %v1667_v10, %v1666_v62  ;;  %v1679_v17 = vadd.f32 %v1678_v48, %v1677_v60  ;;  %v1680_v43 = vsel %vm60_vm5, %v1674_v61, 0.0 }
 0x51e   :  { %1669 = vadd.xlane.f32.xlu0 %v1668_v30  ;;  %v1681_v0 = vadd.f32 %v1680_v43, %v1679_v17 }
 0x520   :  { %1682 = vadd.xlane.f32.xlu1 %v1681_v0 }
 0x531   :  { %1711 = vperm.xlu1 %1809, %v1708_v18  }
 0x534   :  { %1695 = vperm.xlu0 %1808, %v1688_v14  }
 0x5ab   :  { %v1670_v23 = vpop.xlane.xlu0 %1669 }
 0x5ac   :  { %v1684_v2 = vmul.f32 0.001953125, %v1670_v23 }
 0x5ad   :  { %v1683_v26 = vpop.xlane.xlu1 %1682 }
 0x5ae   :  { %v1685_v13 = vmul.f32 0.001953125, %v1683_v26  ;;  %v1686_v1 = vmul.f32 %v1684_v2, %v1684_v2  ;;  %v1689_v6 = vsub.f32 %v1658_v52, %v1684_v2  ;;  %v1690_v15 = vsub.f32 %v1659_v24, %v1684_v2 }
 0x5af   :  { %v1691_v31 = vsub.f32 %v1660_v16, %v1684_v2  ;;  %v1692_v32 = vsub.f32 %v1661_v19, %v1684_v2 }
 0x5b0   :  { %v1687_v29 = vsub.f32 %v1685_v13, %v1686_v1 }
 0x5b1   :  { %v1712_v25 = vpop.permute.xlu1 %1711 }
 0x5b2   :  { %v1702_v5 = vadd.f32 1e-05, %v1687_v29 }
 0x5b3   :  { %v1696_v63 = vpop.permute.xlu0 %1695 }
 0x5b4   :  { %1812 = vrsqrt.f32 %v1702_v5  ;;  %v1698_v33 = vmul.f32 %v1696_v63, %v1689_v6  ;;  %v1699_v35 = vmul.f32 %v1696_v63, %v1690_v15  ;;  %v1700_v12 = vmul.f32 %v1696_v63, %v1691_v31 }
 0x5b5   :  { %v1701_v27 = vmul.f32 %v1696_v63, %v1692_v32 }
 0x5be   :  { %v1813_v8 = vpop.eup %1812 }
 0x5bf   :  { %v1704_v34 = vmul.f32 %v1813_v8, %v1698_v33  ;;  %v1705_v37 = vmul.f32 %v1813_v8, %v1699_v35  ;;  %v1706_v38 = vmul.f32 %v1813_v8, %v1700_v12  ;;  %v1707_v40 = vmul.f32 %v1813_v8, %v1701_v27 }
 0x5c1   :  { %v1714_v46 = vadd.f32 %v1712_v25, %v1704_v34  ;;  %v1715_v22 = vadd.f32 %v1712_v25, %v1705_v37  ;;  %v1716_v3 = vadd.f32 %v1712_v25, %v1706_v38  ;;  %v1717_v4 = vadd.f32 %v1712_v25, %v1707_v40 }
 0x5c3   :  { %v1722_v42 = vcombine.low %v1714_v46, %v1715_v22  ;;  %v1723_v44 = vcombine.low %v1716_v3, %v1717_v4 }
 0x5c5   :  { %1726 = vst [vmem:[#allocation7] sm:$0xff] %v1722_v42  ;;  %1727 = vst [vmem:[#allocation7 + $0x8] sm:$0xff] %v1723_v44 }
 0x5c6   :  { %1849 = shalt.err (!%p1846_p12)
}
 0x5c7   :  { %s1850_s28 = scalar_lea.hbm %s2636_s8, 256 }
 0x5c8   :  { %p1851_p13 = scmp.ne.s32.totalorder %s2636_s8, %s1850_s28  ;;  %p1854_p0 = scmp.lt.u32.totalorder %s1850_s28, %s2636_s8 }
 0x5ca   :  { %p1856_p1 = pnand %p1854_p0, %p1851_p13 }
 0x5cc   :  { %1859 = shalt.err (!%p1856_p1)
}
 0x5cd   :  { %1737 = dma.vmem_to_hbm [thread:$0]  %s1735_s6, 256, %s2636_s8, [#allocation6]  }
 0x5ce   :  { %1862 = dma.done.wait [#allocation6], 256  }
 0x5cf   :  { %1863 = vsyncadd [#allocation6], 4294967040 }
 0x5d0   :  { %1741 = vsyncpa [#allocation5], 1 }
 0x5d1   :  { %1742 = vsyncpa [#allocation6], 1 }

</bundles_post_ra>
